<compile_context>
chip_gen: v6e
topology: v6e:2x2x1
jax: 0.10.0
libtpu: 0.0.40
codegen_flags: <defaults>
</compile_context>

<pallas_src>
import functools
import math

import jax
import jax.numpy as jnp
from jax import lax
from jax.experimental import pallas as pl
from jax.experimental.pallas import tpu as pltpu


# ----------------------------------------------------------------------------
# helpers
# ----------------------------------------------------------------------------
def _logsumexp(z, axis):
    m = jnp.max(z, axis=axis, keepdims=True)
    return m + jnp.log(jnp.sum(jnp.exp(z - m), axis=axis, keepdims=True))


# ----------------------------------------------------------------------------
# Fused kernel: Conv1d(+ReLU) -> n_layers x [OT attention + Linear + ReLU]
#               -> classifier Linear (N padded to 128 lanes), one batch row per step.
# ----------------------------------------------------------------------------
def seq_attention_kernel(cols_ref, convw_ref, convb_ref, wot_ref, wlin_ref,
                         blin_ref, clsw_ref, clsb_ref, o_ref, *,
                         n_layers, heads, out_size, hidden, eps, max_iter):
    # cols_ref:  (1, Lout, K*Cin)         im2col'd input for this batch row
    # convw_ref: (K*Cin, hidden)
    # convb_ref: (1, hidden)
    # wot_ref:   (n_layers*heads, S, D)   OT "weight" (attention references)
    # wlin_ref:  (n_layers*heads, D, D)   Linear(heads*D -> D), reshaped per head
    # blin_ref:  (n_layers, 1, D)
    # clsw_ref:  (S*D, Npad)
    # clsb_ref:  (1, Npad)
    # o_ref:     (1, 1, Npad)
    inv_eps = jnp.float32(1.0 / eps)

    # ---- Conv1d (im2col already built wrapper-side) + ReLU ----
    cols = cols_ref[0].astype(jnp.float32)                              # (Lout, K*Cin)
    h = jnp.dot(cols, convw_ref[...].astype(jnp.float32),
                preferred_element_type=jnp.float32)
    h = jnp.maximum(h + convb_ref[...].astype(jnp.float32), 0.0)        # (Lout, D)

    # ---- OT attention layers (log-domain Sinkhorn), statically unrolled ----
    for layer in range(n_layers):
        L = h.shape[0]
        log_a = jnp.float32(math.log(out_size / L))                     # row marginal (log)
        # accumulate heads directly into the Linear output (init with bias)
        y = jnp.broadcast_to(blin_ref[layer].astype(jnp.float32), (out_size, hidden))
        for hd in range(heads):
            idx = layer * heads + hd
            w_h = wot_ref[idx].astype(jnp.float32)                      # (S, D)
            # scaled cost k = c/eps, (S, L) orientation: long axis (L) on lanes,
            # dot_general contracts D of both operands -> no transposes, MXU-direct.
            k = lax.dot_general(w_h, h, (((1,), (1,)), ((), ())),
                                preferred_element_type=jnp.float32) * inv_eps  # (S, L)
            ut = jnp.zeros((1, L), jnp.float32)                         # u/eps
            vt = jnp.zeros((out_size, 1), jnp.float32)                  # v/eps
            for _ in range(max_iter):                                   # static unroll
                ut = (log_a - _logsumexp(k + ut + vt, axis=0)) + ut
                vt = -_logsumexp(k + ut + vt, axis=1) + vt
            t_plan = jnp.exp(k + ut + vt)                               # (S, L)
            z_h = jnp.dot(t_plan, h, preferred_element_type=jnp.float32)       # (S, D)
            y = y + jnp.dot(z_h, wlin_ref[idx].astype(jnp.float32),
                            preferred_element_type=jnp.float32)
        h = jnp.maximum(y, 0.0)          # ReLU; Dropout = identity (eval)  (S, D)

    # ---- classifier: Linear(S*D -> nclass), N zero-padded to 128 lanes ----
    feat = h.reshape(1, out_size * hidden)
    out = jnp.dot(feat, clsw_ref[...].astype(jnp.float32),
                  preferred_element_type=jnp.float32) + clsb_ref[...].astype(jnp.float32)
    o_ref[...] = out.reshape(1, 1, out.shape[-1]).astype(o_ref.dtype)


def seq_attention_forward(x_ncl, params, *, eps, max_iter):
    # x_ncl: PyTorch-style (B, 4, L). Transpose to channels-last for the kernel.
    x = jnp.transpose(x_ncl, (0, 2, 1))                     # (B, L, Cin)
    B, L, Cin = x.shape
    conv_w = params["conv_w"]                               # (K, Cin, H)
    K, _, H = conv_w.shape
    Lout = L - K + 1
    # im2col (wrapper-side, plain JAX): feature ordered k-major / c-minor, matching
    # conv_w.reshape(K*Cin, H).
    cols = jnp.concatenate([x[:, k:k + Lout, :] for k in range(K)], axis=-1)  # (B,Lout,K*Cin)
    conv_w2 = conv_w.reshape(K * Cin, H)

    layers = params["ot_layers"]
    n_layers = len(layers)
    heads, out_size, D = layers[0]["w_ot"].shape
    d_out = layers[0]["w_lin"].shape[1]
    assert d_out == D == H
    w_ot_all = jnp.concatenate([l["w_ot"] for l in layers], axis=0)            # (nL*h, S, D)
    w_lin_all = jnp.concatenate(
        [l["w_lin"].reshape(heads, D, d_out) for l in layers], axis=0)         # (nL*h, D, D)
    b_lin_all = jnp.stack([l["b_lin"][0] for l in layers], axis=0)[:, None, :] # (nL, 1, D)

    nclass = params["cls_w"].shape[1]
    F = params["cls_w"].shape[0]
    assert F == out_size * d_out
    n_pad = ((nclass + 127) // 128) * 128
    cls_w = jnp.zeros((F, n_pad), params["cls_w"].dtype).at[:, :nclass].set(params["cls_w"])
    cls_b = jnp.zeros((1, n_pad), params["cls_b"].dtype).at[:, :nclass].set(params["cls_b"])

    kern = functools.partial(seq_attention_kernel, n_layers=n_layers, heads=heads,
                             out_size=out_size, hidden=d_out,
                             eps=float(eps), max_iter=int(max_iter))
    KC = K * Cin
    nlh = n_layers * heads
    out = pl.pallas_call(
        kern,
        out_shape=jax.ShapeDtypeStruct((B, 1, n_pad), x.dtype),
        grid=(B,),
        in_specs=[
            pl.BlockSpec((1, Lout, KC), lambda b: (b, 0, 0)),
            pl.BlockSpec((KC, H), lambda b: (0, 0)),
            pl.BlockSpec((1, H), lambda b: (0, 0)),
            pl.BlockSpec((nlh, out_size, D), lambda b: (0, 0, 0)),
            pl.BlockSpec((nlh, D, d_out), lambda b: (0, 0, 0)),
            pl.BlockSpec((n_layers, 1, d_out), lambda b: (0, 0, 0)),
            pl.BlockSpec((F, n_pad), lambda b: (0, 0)),
            pl.BlockSpec((1, n_pad), lambda b: (0, 0)),
        ],
        out_specs=pl.BlockSpec((1, 1, n_pad), lambda b: (b, 0, 0)),
        compiler_params=pltpu.CompilerParams(dimension_semantics=("parallel",)),
    )(cols, conv_w2, params["conv_b"], w_ot_all, w_lin_all, b_lin_all, cls_w, cls_b)
    return out[:, 0, :nclass]


# ----------------------------------------------------------------------------
# Pure-JAX reference (matches PyTorch module semantics, eval mode)
# ----------------------------------------------------------------------------
def ref_forward(x_ncl, params, *, eps, max_iter):
    x = jnp.transpose(x_ncl, (0, 2, 1)).astype(jnp.float32)
    w = params["conv_w"]
    K = w.shape[0]
    Lout = x.shape[1] - K + 1
    acc = jnp.zeros((x.shape[0], Lout, w.shape[2]), jnp.float32)
    for k in range(K):
        acc = acc + jnp.einsum("blc,ch->blh", x[:, k:k + Lout, :], w[k])
    h = jnp.maximum(acc + params["conv_b"], 0.0)

    for lyr in params["ot_layers"]:
        B, L, D = h.shape
        Hh, S, _ = lyr["w_ot"].shape
        c = jnp.einsum("bld,hsd->bhls", h, lyr["w_ot"])
        log_a = math.log(S / L)
        u = jnp.zeros((B, Hh, L, 1), jnp.float32)
        v = jnp.zeros((B, Hh, 1, S), jnp.float32)
        for _ in range(max_iter):
            u = eps * (log_a - _logsumexp((c + u + v) / eps, axis=3)) + u
            v = eps * (-_logsumexp((c + u + v) / eps, axis=2)) + v
        t_plan = jnp.exp((c + u + v) / eps)
        z = jnp.einsum("bhls,bld->bshd", t_plan, h).reshape(B, S, Hh * D)
        h = jnp.maximum(z @ lyr["w_lin"] + lyr["b_lin"], 0.0)

    feat = h.reshape(h.shape[0], -1)
    return feat @ params["cls_w"] + params["cls_b"]


def init_params(key, *, hidden_size, filter_size, n_attn_layers, heads, out_size, nclass):
    def uni(k, shape, fan_in, fan_out):
        bound = math.sqrt(6.0 / (fan_in + fan_out))
        return jax.random.uniform(k, shape, jnp.float32, -bound, bound)

    keys = jax.random.split(key, 2 + 2 * n_attn_layers + 1)
    params = {
        # conv weight stored as (K, Cin, hidden); bias as (1, hidden)
        "conv_w": uni(keys[0], (filter_size, 4, hidden_size), 4 * filter_size, hidden_size),
        "conv_b": uni(keys[1], (1, hidden_size), 4 * filter_size, hidden_size),
        "ot_layers": [],
    }
    for i in range(n_attn_layers):
        k1, k2 = keys[2 + 2 * i], keys[3 + 2 * i]
        params["ot_layers"].append({
            # OT references (heads, out_size, hidden), xavier-style uniform
            "w_ot": uni(k1, (heads, out_size, hidden_size), hidden_size, out_size),
            # Linear(heads*hidden -> hidden), stored pre-transposed (in, out)
            "w_lin": uni(k2, (heads * hidden_size, hidden_size),
                         heads * hidden_size, hidden_size),
            "b_lin": jnp.zeros((1, hidden_size), jnp.float32),
        })
    kc = keys[-1]
    out_features = out_size * hidden_size
    params["cls_w"] = uni(kc, (out_features, nclass), out_features, nclass)
    params["cls_b"] = jnp.zeros((1, nclass), jnp.float32)
    return params


if __name__ == "__main__":
    # Small config consistent with SeqAttention(nclass, hidden_size, filter_size, n_attn_layers)
    B, Cin, L = 2, 4, 16
    hidden_size, filter_size, n_attn_layers = 32, 5, 2
    heads, out_size, eps, max_iter, nclass = 1, 1, 0.1, 10, 3

    key = jax.random.PRNGKey(0)
    k_x, k_p = jax.random.split(key)
    x = jax.random.uniform(k_x, (B, Cin, L), jnp.float32)    # PyTorch NCL input layout
    params = init_params(k_p, hidden_size=hidden_size, filter_size=filter_size,
                         n_attn_layers=n_attn_layers, heads=heads,
                         out_size=out_size, nclass=nclass)

    out = seq_attention_forward(x, params, eps=eps, max_iter=max_iter)
    out = jax.block_until_ready(out)

    ref = jax.block_until_ready(ref_forward(x, params, eps=eps, max_iter=max_iter))
    assert out.shape == (B, nclass), out.shape
    assert jnp.allclose(out, ref, rtol=2e-3, atol=2e-3), (out, ref)

    # TODO(synk): predict() data-loader loop is host-side glue and not translated.
    print("KERNEL_OK")
</pallas_src>

<mosaic_0001>
module attributes {stable_mosaic.version = 11 : i64} {
  func.func @seq_attention_kernel(%arg0: i32, %arg1: memref<1x12x20xf32, #tpu.memory_space<vmem>>, %arg2: memref<20x32xf32, #tpu.memory_space<vmem>>, %arg3: memref<1x32xf32, #tpu.memory_space<vmem>>, %arg4: memref<2x1x32xf32, #tpu.memory_space<vmem>>, %arg5: memref<2x32x32xf32, #tpu.memory_space<vmem>>, %arg6: memref<2x1x32xf32, #tpu.memory_space<vmem>>, %arg7: memref<32x128xf32, #tpu.memory_space<vmem>>, %arg8: memref<1x128xf32, #tpu.memory_space<vmem>>, %arg9: memref<1x1x128xf32, #tpu.memory_space<vmem>>) attributes {dimension_semantics = [#tpu.dimension_semantics<parallel>], iteration_bounds = array<i64: 2>, scalar_prefetch = 0 : i64, scratch_operands = 0 : i64, tpu.core_type = #tpu.core_type<tc>, window_params = [{transform_indices = @transform_0, window_bounds = array<i64: 1, 12, 20>}, {pipeline_mode = #tpu.pipeline_mode<synchronous>, transform_indices = @transform_1, window_bounds = array<i64: 20, 32>}, {pipeline_mode = #tpu.pipeline_mode<synchronous>, transform_indices = @transform_2, window_bounds = array<i64: 1, 32>}, {pipeline_mode = #tpu.pipeline_mode<synchronous>, transform_indices = @transform_3, window_bounds = array<i64: 2, 1, 32>}, {pipeline_mode = #tpu.pipeline_mode<synchronous>, transform_indices = @transform_4, window_bounds = array<i64: 2, 32, 32>}, {pipeline_mode = #tpu.pipeline_mode<synchronous>, transform_indices = @transform_5, window_bounds = array<i64: 2, 1, 32>}, {pipeline_mode = #tpu.pipeline_mode<synchronous>, transform_indices = @transform_6, window_bounds = array<i64: 32, 128>}, {pipeline_mode = #tpu.pipeline_mode<synchronous>, transform_indices = @transform_7, window_bounds = array<i64: 1, 128>}, {transform_indices = @transform_8, window_bounds = array<i64: 1, 1, 128>}]} {
    %c0 = arith.constant 0 : index
    %c0_0 = arith.constant 0 : index
    %c0_1 = arith.constant 0 : index
    %0 = vector.load %arg1[%c0, %c0_0, %c0_1] : memref<1x12x20xf32, #tpu.memory_space<vmem>>, vector<1x12x20xf32>
    %1 = vector.shape_cast %0 : vector<1x12x20xf32> to vector<12x20xf32>
    %c0_2 = arith.constant 0 : index
    %c0_3 = arith.constant 0 : index
    %2 = vector.load %arg2[%c0_2, %c0_3] : memref<20x32xf32, #tpu.memory_space<vmem>>, vector<20x32xf32>
    %cst = arith.constant dense<0.000000e+00> : vector<12x32xf32>
    %3 = tpu.matmul %1, %2, %cst {dimension_numbers = #tpu.dot_dimension_numbers<[1], [0], [0], [1], [0, 0, 1, 1], [], []>} : vector<12x20xf32>, vector<20x32xf32>, vector<12x32xf32> -> vector<12x32xf32>
    %c0_4 = arith.constant 0 : index
    %c0_5 = arith.constant 0 : index
    %4 = vector.load %arg3[%c0_4, %c0_5] : memref<1x32xf32, #tpu.memory_space<vmem>>, vector<1x32xf32>
    %5 = vector.broadcast %4 : vector<1x32xf32> to vector<12x32xf32>
    %6 = arith.addf %3, %5 : vector<12x32xf32>
    %cst_6 = arith.constant 0.000000e+00 : f32
    %7 = vector.broadcast %cst_6 : f32 to vector<12x32xf32>
    %8 = arith.maximumf %6, %7 : vector<12x32xf32>
    %c0_7 = arith.constant 0 : index
    %c0_8 = arith.constant 0 : index
    %c0_9 = arith.constant 0 : index
    %9 = vector.load %arg6[%c0_7, %c0_8, %c0_9] : memref<2x1x32xf32, #tpu.memory_space<vmem>>, vector<1x1x32xf32>
    %10 = vector.shape_cast %9 : vector<1x1x32xf32> to vector<1x32xf32>
    %c0_10 = arith.constant 0 : index
    %c0_11 = arith.constant 0 : index
    %c0_12 = arith.constant 0 : index
    %11 = vector.load %arg4[%c0_10, %c0_11, %c0_12] : memref<2x1x32xf32, #tpu.memory_space<vmem>>, vector<1x1x32xf32>
    %12 = vector.shape_cast %11 : vector<1x1x32xf32> to vector<1x32xf32>
    %cst_13 = arith.constant dense<0.000000e+00> : vector<1x12xf32>
    %13 = tpu.matmul %12, %8, %cst_13 {dimension_numbers = #tpu.dot_dimension_numbers<[1], [1], [0], [0], [0, 0, 1, 0], [], []>} : vector<1x32xf32>, vector<12x32xf32>, vector<1x12xf32> -> vector<1x12xf32>
    %cst_14 = arith.constant 1.000000e+01 : f32
    %14 = vector.broadcast %cst_14 : f32 to vector<1x12xf32>
    %15 = arith.mulf %13, %14 : vector<1x12xf32>
    %cst_15 = arith.constant 0.000000e+00 : f32
    %16 = vector.broadcast %cst_15 : f32 to vector<1x12xf32>
    %cst_16 = arith.constant 0.000000e+00 : f32
    %17 = vector.broadcast %cst_16 : f32 to vector<1x1xf32>
    %18 = arith.addf %15, %16 : vector<1x12xf32>
    %19 = vector.broadcast %17 : vector<1x1xf32> to vector<1x12xf32>
    %20 = arith.addf %18, %19 : vector<1x12xf32>
    %cst_17 = arith.constant dense<0xFF800000> : vector<12xf32>
    %21 = vector.multi_reduction <maximumf>, %20, %cst_17 [0] : vector<1x12xf32> to vector<12xf32>
    %22 = vector.shape_cast %21 : vector<12xf32> to vector<1x12xf32>
    %23 = arith.subf %20, %22 : vector<1x12xf32>
    %24 = math.exp %23 : vector<1x12xf32>
    %cst_18 = arith.constant dense<0.000000e+00> : vector<12xf32>
    %25 = vector.multi_reduction <add>, %24, %cst_18 [0] : vector<1x12xf32> to vector<12xf32>
    %26 = vector.shape_cast %25 : vector<12xf32> to vector<1x12xf32>
    %27 = math.log %26 : vector<1x12xf32>
    %28 = arith.addf %22, %27 : vector<1x12xf32>
    %cst_19 = arith.constant -2.48490667 : f32
    %29 = vector.broadcast %cst_19 : f32 to vector<1x12xf32>
    %30 = arith.subf %29, %28 : vector<1x12xf32>
    %31 = arith.addf %30, %16 : vector<1x12xf32>
    %32 = arith.addf %15, %31 : vector<1x12xf32>
    %33 = vector.broadcast %17 : vector<1x1xf32> to vector<1x12xf32>
    %34 = arith.addf %32, %33 : vector<1x12xf32>
    %cst_20 = arith.constant dense<0xFF800000> : vector<1xf32>
    %35 = vector.multi_reduction <maximumf>, %34, %cst_20 [1] : vector<1x12xf32> to vector<1xf32>
    %36 = vector.shape_cast %35 : vector<1xf32> to vector<1x1xf32>
    %37 = vector.broadcast %36 : vector<1x1xf32> to vector<1x12xf32>
    %38 = arith.subf %34, %37 : vector<1x12xf32>
    %39 = math.exp %38 : vector<1x12xf32>
    %cst_21 = arith.constant dense<0.000000e+00> : vector<1xf32>
    %40 = vector.multi_reduction <add>, %39, %cst_21 [1] : vector<1x12xf32> to vector<1xf32>
    %41 = vector.shape_cast %40 : vector<1xf32> to vector<1x1xf32>
    %42 = math.log %41 : vector<1x1xf32>
    %43 = arith.addf %36, %42 : vector<1x1xf32>
    %cst_22 = arith.constant 0.000000e+00 : f32
    %44 = vector.broadcast %cst_22 : f32 to vector<1x1xf32>
    %45 = arith.subf %44, %43 : vector<1x1xf32>
    %46 = arith.addf %45, %17 : vector<1x1xf32>
    %47 = arith.addf %15, %31 : vector<1x12xf32>
    %48 = vector.broadcast %46 : vector<1x1xf32> to vector<1x12xf32>
    %49 = arith.addf %47, %48 : vector<1x12xf32>
    %cst_23 = arith.constant dense<0xFF800000> : vector<12xf32>
    %50 = vector.multi_reduction <maximumf>, %49, %cst_23 [0] : vector<1x12xf32> to vector<12xf32>
    %51 = vector.shape_cast %50 : vector<12xf32> to vector<1x12xf32>
    %52 = arith.subf %49, %51 : vector<1x12xf32>
    %53 = math.exp %52 : vector<1x12xf32>
    %cst_24 = arith.constant dense<0.000000e+00> : vector<12xf32>
    %54 = vector.multi_reduction <add>, %53, %cst_24 [0] : vector<1x12xf32> to vector<12xf32>
    %55 = vector.shape_cast %54 : vector<12xf32> to vector<1x12xf32>
    %56 = math.log %55 : vector<1x12xf32>
    %57 = arith.addf %51, %56 : vector<1x12xf32>
    %cst_25 = arith.constant -2.48490667 : f32
    %58 = vector.broadcast %cst_25 : f32 to vector<1x12xf32>
    %59 = arith.subf %58, %57 : vector<1x12xf32>
    %60 = arith.addf %59, %31 : vector<1x12xf32>
    %61 = arith.addf %15, %60 : vector<1x12xf32>
    %62 = vector.broadcast %46 : vector<1x1xf32> to vector<1x12xf32>
    %63 = arith.addf %61, %62 : vector<1x12xf32>
    %cst_26 = arith.constant dense<0xFF800000> : vector<1xf32>
    %64 = vector.multi_reduction <maximumf>, %63, %cst_26 [1] : vector<1x12xf32> to vector<1xf32>
    %65 = vector.shape_cast %64 : vector<1xf32> to vector<1x1xf32>
    %66 = vector.broadcast %65 : vector<1x1xf32> to vector<1x12xf32>
    %67 = arith.subf %63, %66 : vector<1x12xf32>
    %68 = math.exp %67 : vector<1x12xf32>
    %cst_27 = arith.constant dense<0.000000e+00> : vector<1xf32>
    %69 = vector.multi_reduction <add>, %68, %cst_27 [1] : vector<1x12xf32> to vector<1xf32>
    %70 = vector.shape_cast %69 : vector<1xf32> to vector<1x1xf32>
    %71 = math.log %70 : vector<1x1xf32>
    %72 = arith.addf %65, %71 : vector<1x1xf32>
    %cst_28 = arith.constant 0.000000e+00 : f32
    %73 = vector.broadcast %cst_28 : f32 to vector<1x1xf32>
    %74 = arith.subf %73, %72 : vector<1x1xf32>
    %75 = arith.addf %74, %46 : vector<1x1xf32>
    %76 = arith.addf %15, %60 : vector<1x12xf32>
    %77 = vector.broadcast %75 : vector<1x1xf32> to vector<1x12xf32>
    %78 = arith.addf %76, %77 : vector<1x12xf32>
    %cst_29 = arith.constant dense<0xFF800000> : vector<12xf32>
    %79 = vector.multi_reduction <maximumf>, %78, %cst_29 [0] : vector<1x12xf32> to vector<12xf32>
    %80 = vector.shape_cast %79 : vector<12xf32> to vector<1x12xf32>
    %81 = arith.subf %78, %80 : vector<1x12xf32>
    %82 = math.exp %81 : vector<1x12xf32>
    %cst_30 = arith.constant dense<0.000000e+00> : vector<12xf32>
    %83 = vector.multi_reduction <add>, %82, %cst_30 [0] : vector<1x12xf32> to vector<12xf32>
    %84 = vector.shape_cast %83 : vector<12xf32> to vector<1x12xf32>
    %85 = math.log %84 : vector<1x12xf32>
    %86 = arith.addf %80, %85 : vector<1x12xf32>
    %cst_31 = arith.constant -2.48490667 : f32
    %87 = vector.broadcast %cst_31 : f32 to vector<1x12xf32>
    %88 = arith.subf %87, %86 : vector<1x12xf32>
    %89 = arith.addf %88, %60 : vector<1x12xf32>
    %90 = arith.addf %15, %89 : vector<1x12xf32>
    %91 = vector.broadcast %75 : vector<1x1xf32> to vector<1x12xf32>
    %92 = arith.addf %90, %91 : vector<1x12xf32>
    %cst_32 = arith.constant dense<0xFF800000> : vector<1xf32>
    %93 = vector.multi_reduction <maximumf>, %92, %cst_32 [1] : vector<1x12xf32> to vector<1xf32>
    %94 = vector.shape_cast %93 : vector<1xf32> to vector<1x1xf32>
    %95 = vector.broadcast %94 : vector<1x1xf32> to vector<1x12xf32>
    %96 = arith.subf %92, %95 : vector<1x12xf32>
    %97 = math.exp %96 : vector<1x12xf32>
    %cst_33 = arith.constant dense<0.000000e+00> : vector<1xf32>
    %98 = vector.multi_reduction <add>, %97, %cst_33 [1] : vector<1x12xf32> to vector<1xf32>
    %99 = vector.shape_cast %98 : vector<1xf32> to vector<1x1xf32>
    %100 = math.log %99 : vector<1x1xf32>
    %101 = arith.addf %94, %100 : vector<1x1xf32>
    %cst_34 = arith.constant 0.000000e+00 : f32
    %102 = vector.broadcast %cst_34 : f32 to vector<1x1xf32>
    %103 = arith.subf %102, %101 : vector<1x1xf32>
    %104 = arith.addf %103, %75 : vector<1x1xf32>
    %105 = arith.addf %15, %89 : vector<1x12xf32>
    %106 = vector.broadcast %104 : vector<1x1xf32> to vector<1x12xf32>
    %107 = arith.addf %105, %106 : vector<1x12xf32>
    %cst_35 = arith.constant dense<0xFF800000> : vector<12xf32>
    %108 = vector.multi_reduction <maximumf>, %107, %cst_35 [0] : vector<1x12xf32> to vector<12xf32>
    %109 = vector.shape_cast %108 : vector<12xf32> to vector<1x12xf32>
    %110 = arith.subf %107, %109 : vector<1x12xf32>
    %111 = math.exp %110 : vector<1x12xf32>
    %cst_36 = arith.constant dense<0.000000e+00> : vector<12xf32>
    %112 = vector.multi_reduction <add>, %111, %cst_36 [0] : vector<1x12xf32> to vector<12xf32>
    %113 = vector.shape_cast %112 : vector<12xf32> to vector<1x12xf32>
    %114 = math.log %113 : vector<1x12xf32>
    %115 = arith.addf %109, %114 : vector<1x12xf32>
    %cst_37 = arith.constant -2.48490667 : f32
    %116 = vector.broadcast %cst_37 : f32 to vector<1x12xf32>
    %117 = arith.subf %116, %115 : vector<1x12xf32>
    %118 = arith.addf %117, %89 : vector<1x12xf32>
    %119 = arith.addf %15, %118 : vector<1x12xf32>
    %120 = vector.broadcast %104 : vector<1x1xf32> to vector<1x12xf32>
    %121 = arith.addf %119, %120 : vector<1x12xf32>
    %cst_38 = arith.constant dense<0xFF800000> : vector<1xf32>
    %122 = vector.multi_reduction <maximumf>, %121, %cst_38 [1] : vector<1x12xf32> to vector<1xf32>
    %123 = vector.shape_cast %122 : vector<1xf32> to vector<1x1xf32>
    %124 = vector.broadcast %123 : vector<1x1xf32> to vector<1x12xf32>
    %125 = arith.subf %121, %124 : vector<1x12xf32>
    %126 = math.exp %125 : vector<1x12xf32>
    %cst_39 = arith.constant dense<0.000000e+00> : vector<1xf32>
    %127 = vector.multi_reduction <add>, %126, %cst_39 [1] : vector<1x12xf32> to vector<1xf32>
    %128 = vector.shape_cast %127 : vector<1xf32> to vector<1x1xf32>
    %129 = math.log %128 : vector<1x1xf32>
    %130 = arith.addf %123, %129 : vector<1x1xf32>
    %cst_40 = arith.constant 0.000000e+00 : f32
    %131 = vector.broadcast %cst_40 : f32 to vector<1x1xf32>
    %132 = arith.subf %131, %130 : vector<1x1xf32>
    %133 = arith.addf %132, %104 : vector<1x1xf32>
    %134 = arith.addf %15, %118 : vector<1x12xf32>
    %135 = vector.broadcast %133 : vector<1x1xf32> to vector<1x12xf32>
    %136 = arith.addf %134, %135 : vector<1x12xf32>
    %cst_41 = arith.constant dense<0xFF800000> : vector<12xf32>
    %137 = vector.multi_reduction <maximumf>, %136, %cst_41 [0] : vector<1x12xf32> to vector<12xf32>
    %138 = vector.shape_cast %137 : vector<12xf32> to vector<1x12xf32>
    %139 = arith.subf %136, %138 : vector<1x12xf32>
    %140 = math.exp %139 : vector<1x12xf32>
    %cst_42 = arith.constant dense<0.000000e+00> : vector<12xf32>
    %141 = vector.multi_reduction <add>, %140, %cst_42 [0] : vector<1x12xf32> to vector<12xf32>
    %142 = vector.shape_cast %141 : vector<12xf32> to vector<1x12xf32>
    %143 = math.log %142 : vector<1x12xf32>
    %144 = arith.addf %138, %143 : vector<1x12xf32>
    %cst_43 = arith.constant -2.48490667 : f32
    %145 = vector.broadcast %cst_43 : f32 to vector<1x12xf32>
    %146 = arith.subf %145, %144 : vector<1x12xf32>
    %147 = arith.addf %146, %118 : vector<1x12xf32>
    %148 = arith.addf %15, %147 : vector<1x12xf32>
    %149 = vector.broadcast %133 : vector<1x1xf32> to vector<1x12xf32>
    %150 = arith.addf %148, %149 : vector<1x12xf32>
    %cst_44 = arith.constant dense<0xFF800000> : vector<1xf32>
    %151 = vector.multi_reduction <maximumf>, %150, %cst_44 [1] : vector<1x12xf32> to vector<1xf32>
    %152 = vector.shape_cast %151 : vector<1xf32> to vector<1x1xf32>
    %153 = vector.broadcast %152 : vector<1x1xf32> to vector<1x12xf32>
    %154 = arith.subf %150, %153 : vector<1x12xf32>
    %155 = math.exp %154 : vector<1x12xf32>
    %cst_45 = arith.constant dense<0.000000e+00> : vector<1xf32>
    %156 = vector.multi_reduction <add>, %155, %cst_45 [1] : vector<1x12xf32> to vector<1xf32>
    %157 = vector.shape_cast %156 : vector<1xf32> to vector<1x1xf32>
    %158 = math.log %157 : vector<1x1xf32>
    %159 = arith.addf %152, %158 : vector<1x1xf32>
    %cst_46 = arith.constant 0.000000e+00 : f32
    %160 = vector.broadcast %cst_46 : f32 to vector<1x1xf32>
    %161 = arith.subf %160, %159 : vector<1x1xf32>
    %162 = arith.addf %161, %133 : vector<1x1xf32>
    %163 = arith.addf %15, %147 : vector<1x12xf32>
    %164 = vector.broadcast %162 : vector<1x1xf32> to vector<1x12xf32>
    %165 = arith.addf %163, %164 : vector<1x12xf32>
    %cst_47 = arith.constant dense<0xFF800000> : vector<12xf32>
    %166 = vector.multi_reduction <maximumf>, %165, %cst_47 [0] : vector<1x12xf32> to vector<12xf32>
    %167 = vector.shape_cast %166 : vector<12xf32> to vector<1x12xf32>
    %168 = arith.subf %165, %167 : vector<1x12xf32>
    %169 = math.exp %168 : vector<1x12xf32>
    %cst_48 = arith.constant dense<0.000000e+00> : vector<12xf32>
    %170 = vector.multi_reduction <add>, %169, %cst_48 [0] : vector<1x12xf32> to vector<12xf32>
    %171 = vector.shape_cast %170 : vector<12xf32> to vector<1x12xf32>
    %172 = math.log %171 : vector<1x12xf32>
    %173 = arith.addf %167, %172 : vector<1x12xf32>
    %cst_49 = arith.constant -2.48490667 : f32
    %174 = vector.broadcast %cst_49 : f32 to vector<1x12xf32>
    %175 = arith.subf %174, %173 : vector<1x12xf32>
    %176 = arith.addf %175, %147 : vector<1x12xf32>
    %177 = arith.addf %15, %176 : vector<1x12xf32>
    %178 = vector.broadcast %162 : vector<1x1xf32> to vector<1x12xf32>
    %179 = arith.addf %177, %178 : vector<1x12xf32>
    %cst_50 = arith.constant dense<0xFF800000> : vector<1xf32>
    %180 = vector.multi_reduction <maximumf>, %179, %cst_50 [1] : vector<1x12xf32> to vector<1xf32>
    %181 = vector.shape_cast %180 : vector<1xf32> to vector<1x1xf32>
    %182 = vector.broadcast %181 : vector<1x1xf32> to vector<1x12xf32>
    %183 = arith.subf %179, %182 : vector<1x12xf32>
    %184 = math.exp %183 : vector<1x12xf32>
    %cst_51 = arith.constant dense<0.000000e+00> : vector<1xf32>
    %185 = vector.multi_reduction <add>, %184, %cst_51 [1] : vector<1x12xf32> to vector<1xf32>
    %186 = vector.shape_cast %185 : vector<1xf32> to vector<1x1xf32>
    %187 = math.log %186 : vector<1x1xf32>
    %188 = arith.addf %181, %187 : vector<1x1xf32>
    %cst_52 = arith.constant 0.000000e+00 : f32
    %189 = vector.broadcast %cst_52 : f32 to vector<1x1xf32>
    %190 = arith.subf %189, %188 : vector<1x1xf32>
    %191 = arith.addf %190, %162 : vector<1x1xf32>
    %192 = arith.addf %15, %176 : vector<1x12xf32>
    %193 = vector.broadcast %191 : vector<1x1xf32> to vector<1x12xf32>
    %194 = arith.addf %192, %193 : vector<1x12xf32>
    %cst_53 = arith.constant dense<0xFF800000> : vector<12xf32>
    %195 = vector.multi_reduction <maximumf>, %194, %cst_53 [0] : vector<1x12xf32> to vector<12xf32>
    %196 = vector.shape_cast %195 : vector<12xf32> to vector<1x12xf32>
    %197 = arith.subf %194, %196 : vector<1x12xf32>
    %198 = math.exp %197 : vector<1x12xf32>
    %cst_54 = arith.constant dense<0.000000e+00> : vector<12xf32>
    %199 = vector.multi_reduction <add>, %198, %cst_54 [0] : vector<1x12xf32> to vector<12xf32>
    %200 = vector.shape_cast %199 : vector<12xf32> to vector<1x12xf32>
    %201 = math.log %200 : vector<1x12xf32>
    %202 = arith.addf %196, %201 : vector<1x12xf32>
    %cst_55 = arith.constant -2.48490667 : f32
    %203 = vector.broadcast %cst_55 : f32 to vector<1x12xf32>
    %204 = arith.subf %203, %202 : vector<1x12xf32>
    %205 = arith.addf %204, %176 : vector<1x12xf32>
    %206 = arith.addf %15, %205 : vector<1x12xf32>
    %207 = vector.broadcast %191 : vector<1x1xf32> to vector<1x12xf32>
    %208 = arith.addf %206, %207 : vector<1x12xf32>
    %cst_56 = arith.constant dense<0xFF800000> : vector<1xf32>
    %209 = vector.multi_reduction <maximumf>, %208, %cst_56 [1] : vector<1x12xf32> to vector<1xf32>
    %210 = vector.shape_cast %209 : vector<1xf32> to vector<1x1xf32>
    %211 = vector.broadcast %210 : vector<1x1xf32> to vector<1x12xf32>
    %212 = arith.subf %208, %211 : vector<1x12xf32>
    %213 = math.exp %212 : vector<1x12xf32>
    %cst_57 = arith.constant dense<0.000000e+00> : vector<1xf32>
    %214 = vector.multi_reduction <add>, %213, %cst_57 [1] : vector<1x12xf32> to vector<1xf32>
    %215 = vector.shape_cast %214 : vector<1xf32> to vector<1x1xf32>
    %216 = math.log %215 : vector<1x1xf32>
    %217 = arith.addf %210, %216 : vector<1x1xf32>
    %cst_58 = arith.constant 0.000000e+00 : f32
    %218 = vector.broadcast %cst_58 : f32 to vector<1x1xf32>
    %219 = arith.subf %218, %217 : vector<1x1xf32>
    %220 = arith.addf %219, %191 : vector<1x1xf32>
    %221 = arith.addf %15, %205 : vector<1x12xf32>
    %222 = vector.broadcast %220 : vector<1x1xf32> to vector<1x12xf32>
    %223 = arith.addf %221, %222 : vector<1x12xf32>
    %cst_59 = arith.constant dense<0xFF800000> : vector<12xf32>
    %224 = vector.multi_reduction <maximumf>, %223, %cst_59 [0] : vector<1x12xf32> to vector<12xf32>
    %225 = vector.shape_cast %224 : vector<12xf32> to vector<1x12xf32>
    %226 = arith.subf %223, %225 : vector<1x12xf32>
    %227 = math.exp %226 : vector<1x12xf32>
    %cst_60 = arith.constant dense<0.000000e+00> : vector<12xf32>
    %228 = vector.multi_reduction <add>, %227, %cst_60 [0] : vector<1x12xf32> to vector<12xf32>
    %229 = vector.shape_cast %228 : vector<12xf32> to vector<1x12xf32>
    %230 = math.log %229 : vector<1x12xf32>
    %231 = arith.addf %225, %230 : vector<1x12xf32>
    %cst_61 = arith.constant -2.48490667 : f32
    %232 = vector.broadcast %cst_61 : f32 to vector<1x12xf32>
    %233 = arith.subf %232, %231 : vector<1x12xf32>
    %234 = arith.addf %233, %205 : vector<1x12xf32>
    %235 = arith.addf %15, %234 : vector<1x12xf32>
    %236 = vector.broadcast %220 : vector<1x1xf32> to vector<1x12xf32>
    %237 = arith.addf %235, %236 : vector<1x12xf32>
    %cst_62 = arith.constant dense<0xFF800000> : vector<1xf32>
    %238 = vector.multi_reduction <maximumf>, %237, %cst_62 [1] : vector<1x12xf32> to vector<1xf32>
    %239 = vector.shape_cast %238 : vector<1xf32> to vector<1x1xf32>
    %240 = vector.broadcast %239 : vector<1x1xf32> to vector<1x12xf32>
    %241 = arith.subf %237, %240 : vector<1x12xf32>
    %242 = math.exp %241 : vector<1x12xf32>
    %cst_63 = arith.constant dense<0.000000e+00> : vector<1xf32>
    %243 = vector.multi_reduction <add>, %242, %cst_63 [1] : vector<1x12xf32> to vector<1xf32>
    %244 = vector.shape_cast %243 : vector<1xf32> to vector<1x1xf32>
    %245 = math.log %244 : vector<1x1xf32>
    %246 = arith.addf %239, %245 : vector<1x1xf32>
    %cst_64 = arith.constant 0.000000e+00 : f32
    %247 = vector.broadcast %cst_64 : f32 to vector<1x1xf32>
    %248 = arith.subf %247, %246 : vector<1x1xf32>
    %249 = arith.addf %248, %220 : vector<1x1xf32>
    %250 = arith.addf %15, %234 : vector<1x12xf32>
    %251 = vector.broadcast %249 : vector<1x1xf32> to vector<1x12xf32>
    %252 = arith.addf %250, %251 : vector<1x12xf32>
    %cst_65 = arith.constant dense<0xFF800000> : vector<12xf32>
    %253 = vector.multi_reduction <maximumf>, %252, %cst_65 [0] : vector<1x12xf32> to vector<12xf32>
    %254 = vector.shape_cast %253 : vector<12xf32> to vector<1x12xf32>
    %255 = arith.subf %252, %254 : vector<1x12xf32>
    %256 = math.exp %255 : vector<1x12xf32>
    %cst_66 = arith.constant dense<0.000000e+00> : vector<12xf32>
    %257 = vector.multi_reduction <add>, %256, %cst_66 [0] : vector<1x12xf32> to vector<12xf32>
    %258 = vector.shape_cast %257 : vector<12xf32> to vector<1x12xf32>
    %259 = math.log %258 : vector<1x12xf32>
    %260 = arith.addf %254, %259 : vector<1x12xf32>
    %cst_67 = arith.constant -2.48490667 : f32
    %261 = vector.broadcast %cst_67 : f32 to vector<1x12xf32>
    %262 = arith.subf %261, %260 : vector<1x12xf32>
    %263 = arith.addf %262, %234 : vector<1x12xf32>
    %264 = arith.addf %15, %263 : vector<1x12xf32>
    %265 = vector.broadcast %249 : vector<1x1xf32> to vector<1x12xf32>
    %266 = arith.addf %264, %265 : vector<1x12xf32>
    %cst_68 = arith.constant dense<0xFF800000> : vector<1xf32>
    %267 = vector.multi_reduction <maximumf>, %266, %cst_68 [1] : vector<1x12xf32> to vector<1xf32>
    %268 = vector.shape_cast %267 : vector<1xf32> to vector<1x1xf32>
    %269 = vector.broadcast %268 : vector<1x1xf32> to vector<1x12xf32>
    %270 = arith.subf %266, %269 : vector<1x12xf32>
    %271 = math.exp %270 : vector<1x12xf32>
    %cst_69 = arith.constant dense<0.000000e+00> : vector<1xf32>
    %272 = vector.multi_reduction <add>, %271, %cst_69 [1] : vector<1x12xf32> to vector<1xf32>
    %273 = vector.shape_cast %272 : vector<1xf32> to vector<1x1xf32>
    %274 = math.log %273 : vector<1x1xf32>
    %275 = arith.addf %268, %274 : vector<1x1xf32>
    %cst_70 = arith.constant 0.000000e+00 : f32
    %276 = vector.broadcast %cst_70 : f32 to vector<1x1xf32>
    %277 = arith.subf %276, %275 : vector<1x1xf32>
    %278 = arith.addf %277, %249 : vector<1x1xf32>
    %279 = arith.addf %15, %263 : vector<1x12xf32>
    %280 = vector.broadcast %278 : vector<1x1xf32> to vector<1x12xf32>
    %281 = arith.addf %279, %280 : vector<1x12xf32>
    %cst_71 = arith.constant dense<0xFF800000> : vector<12xf32>
    %282 = vector.multi_reduction <maximumf>, %281, %cst_71 [0] : vector<1x12xf32> to vector<12xf32>
    %283 = vector.shape_cast %282 : vector<12xf32> to vector<1x12xf32>
    %284 = arith.subf %281, %283 : vector<1x12xf32>
    %285 = math.exp %284 : vector<1x12xf32>
    %cst_72 = arith.constant dense<0.000000e+00> : vector<12xf32>
    %286 = vector.multi_reduction <add>, %285, %cst_72 [0] : vector<1x12xf32> to vector<12xf32>
    %287 = vector.shape_cast %286 : vector<12xf32> to vector<1x12xf32>
    %288 = math.log %287 : vector<1x12xf32>
    %289 = arith.addf %283, %288 : vector<1x12xf32>
    %cst_73 = arith.constant -2.48490667 : f32
    %290 = vector.broadcast %cst_73 : f32 to vector<1x12xf32>
    %291 = arith.subf %290, %289 : vector<1x12xf32>
    %292 = arith.addf %291, %263 : vector<1x12xf32>
    %293 = arith.addf %15, %292 : vector<1x12xf32>
    %294 = vector.broadcast %278 : vector<1x1xf32> to vector<1x12xf32>
    %295 = arith.addf %293, %294 : vector<1x12xf32>
    %cst_74 = arith.constant dense<0xFF800000> : vector<1xf32>
    %296 = vector.multi_reduction <maximumf>, %295, %cst_74 [1] : vector<1x12xf32> to vector<1xf32>
    %297 = vector.shape_cast %296 : vector<1xf32> to vector<1x1xf32>
    %298 = vector.broadcast %297 : vector<1x1xf32> to vector<1x12xf32>
    %299 = arith.subf %295, %298 : vector<1x12xf32>
    %300 = math.exp %299 : vector<1x12xf32>
    %cst_75 = arith.constant dense<0.000000e+00> : vector<1xf32>
    %301 = vector.multi_reduction <add>, %300, %cst_75 [1] : vector<1x12xf32> to vector<1xf32>
    %302 = vector.shape_cast %301 : vector<1xf32> to vector<1x1xf32>
    %303 = math.log %302 : vector<1x1xf32>
    %304 = arith.addf %297, %303 : vector<1x1xf32>
    %cst_76 = arith.constant 0.000000e+00 : f32
    %305 = vector.broadcast %cst_76 : f32 to vector<1x1xf32>
    %306 = arith.subf %305, %304 : vector<1x1xf32>
    %307 = arith.addf %306, %278 : vector<1x1xf32>
    %308 = arith.addf %15, %292 : vector<1x12xf32>
    %309 = vector.broadcast %307 : vector<1x1xf32> to vector<1x12xf32>
    %310 = arith.addf %308, %309 : vector<1x12xf32>
    %311 = math.exp %310 : vector<1x12xf32>
    %cst_77 = arith.constant dense<0.000000e+00> : vector<1x32xf32>
    %312 = tpu.matmul %311, %8, %cst_77 {dimension_numbers = #tpu.dot_dimension_numbers<[1], [0], [0], [1], [0, 0, 1, 1], [], []>} : vector<1x12xf32>, vector<12x32xf32>, vector<1x32xf32> -> vector<1x32xf32>
    %c0_78 = arith.constant 0 : index
    %c0_79 = arith.constant 0 : index
    %c0_80 = arith.constant 0 : index
    %313 = vector.load %arg5[%c0_78, %c0_79, %c0_80] : memref<2x32x32xf32, #tpu.memory_space<vmem>>, vector<1x32x32xf32>
    %314 = vector.shape_cast %313 : vector<1x32x32xf32> to vector<32x32xf32>
    %cst_81 = arith.constant dense<0.000000e+00> : vector<1x32xf32>
    %315 = tpu.matmul %312, %314, %cst_81 {dimension_numbers = #tpu.dot_dimension_numbers<[1], [0], [0], [1], [0, 0, 1, 1], [], []>} : vector<1x32xf32>, vector<32x32xf32>, vector<1x32xf32> -> vector<1x32xf32>
    %316 = arith.addf %10, %315 : vector<1x32xf32>
    %cst_82 = arith.constant 0.000000e+00 : f32
    %317 = vector.broadcast %cst_82 : f32 to vector<1x32xf32>
    %318 = arith.maximumf %316, %317 : vector<1x32xf32>
    %c1 = arith.constant 1 : index
    %c0_83 = arith.constant 0 : index
    %c0_84 = arith.constant 0 : index
    %319 = vector.load %arg6[%c1, %c0_83, %c0_84] : memref<2x1x32xf32, #tpu.memory_space<vmem>>, vector<1x1x32xf32>
    %320 = vector.shape_cast %319 : vector<1x1x32xf32> to vector<1x32xf32>
    %c1_85 = arith.constant 1 : index
    %c0_86 = arith.constant 0 : index
    %c0_87 = arith.constant 0 : index
    %321 = vector.load %arg4[%c1_85, %c0_86, %c0_87] : memref<2x1x32xf32, #tpu.memory_space<vmem>>, vector<1x1x32xf32>
    %322 = vector.shape_cast %321 : vector<1x1x32xf32> to vector<1x32xf32>
    %cst_88 = arith.constant dense<0.000000e+00> : vector<1x1xf32>
    %323 = tpu.matmul %322, %318, %cst_88 {dimension_numbers = #tpu.dot_dimension_numbers<[1], [1], [0], [0], [0, 0, 1, 0], [], []>} : vector<1x32xf32>, vector<1x32xf32>, vector<1x1xf32> -> vector<1x1xf32>
    %cst_89 = arith.constant 1.000000e+01 : f32
    %324 = vector.broadcast %cst_89 : f32 to vector<1x1xf32>
    %325 = arith.mulf %323, %324 : vector<1x1xf32>
    %cst_90 = arith.constant 0.000000e+00 : f32
    %326 = vector.broadcast %cst_90 : f32 to vector<1x1xf32>
    %cst_91 = arith.constant 0.000000e+00 : f32
    %327 = vector.broadcast %cst_91 : f32 to vector<1x1xf32>
    %328 = arith.addf %325, %326 : vector<1x1xf32>
    %329 = arith.addf %328, %327 : vector<1x1xf32>
    %cst_92 = arith.constant dense<0xFF800000> : vector<1xf32>
    %330 = vector.multi_reduction <maximumf>, %329, %cst_92 [0] : vector<1x1xf32> to vector<1xf32>
    %331 = vector.shape_cast %330 : vector<1xf32> to vector<1x1xf32>
    %332 = arith.subf %329, %331 : vector<1x1xf32>
    %333 = math.exp %332 : vector<1x1xf32>
    %cst_93 = arith.constant dense<0.000000e+00> : vector<1xf32>
    %334 = vector.multi_reduction <add>, %333, %cst_93 [0] : vector<1x1xf32> to vector<1xf32>
    %335 = vector.shape_cast %334 : vector<1xf32> to vector<1x1xf32>
    %336 = math.log %335 : vector<1x1xf32>
    %337 = arith.addf %331, %336 : vector<1x1xf32>
    %cst_94 = arith.constant 0.000000e+00 : f32
    %338 = vector.broadcast %cst_94 : f32 to vector<1x1xf32>
    %339 = arith.subf %338, %337 : vector<1x1xf32>
    %340 = arith.addf %339, %326 : vector<1x1xf32>
    %341 = arith.addf %325, %340 : vector<1x1xf32>
    %342 = arith.addf %341, %327 : vector<1x1xf32>
    %cst_95 = arith.constant dense<0xFF800000> : vector<1xf32>
    %343 = vector.multi_reduction <maximumf>, %342, %cst_95 [1] : vector<1x1xf32> to vector<1xf32>
    %344 = vector.shape_cast %343 : vector<1xf32> to vector<1x1xf32>
    %345 = arith.subf %342, %344 : vector<1x1xf32>
    %346 = math.exp %345 : vector<1x1xf32>
    %cst_96 = arith.constant dense<0.000000e+00> : vector<1xf32>
    %347 = vector.multi_reduction <add>, %346, %cst_96 [1] : vector<1x1xf32> to vector<1xf32>
    %348 = vector.shape_cast %347 : vector<1xf32> to vector<1x1xf32>
    %349 = math.log %348 : vector<1x1xf32>
    %350 = arith.addf %344, %349 : vector<1x1xf32>
    %cst_97 = arith.constant 0.000000e+00 : f32
    %351 = vector.broadcast %cst_97 : f32 to vector<1x1xf32>
    %352 = arith.subf %351, %350 : vector<1x1xf32>
    %353 = arith.addf %352, %327 : vector<1x1xf32>
    %354 = arith.addf %325, %340 : vector<1x1xf32>
    %355 = arith.addf %354, %353 : vector<1x1xf32>
    %cst_98 = arith.constant dense<0xFF800000> : vector<1xf32>
    %356 = vector.multi_reduction <maximumf>, %355, %cst_98 [0] : vector<1x1xf32> to vector<1xf32>
    %357 = vector.shape_cast %356 : vector<1xf32> to vector<1x1xf32>
    %358 = arith.subf %355, %357 : vector<1x1xf32>
    %359 = math.exp %358 : vector<1x1xf32>
    %cst_99 = arith.constant dense<0.000000e+00> : vector<1xf32>
    %360 = vector.multi_reduction <add>, %359, %cst_99 [0] : vector<1x1xf32> to vector<1xf32>
    %361 = vector.shape_cast %360 : vector<1xf32> to vector<1x1xf32>
    %362 = math.log %361 : vector<1x1xf32>
    %363 = arith.addf %357, %362 : vector<1x1xf32>
    %cst_100 = arith.constant 0.000000e+00 : f32
    %364 = vector.broadcast %cst_100 : f32 to vector<1x1xf32>
    %365 = arith.subf %364, %363 : vector<1x1xf32>
    %366 = arith.addf %365, %340 : vector<1x1xf32>
    %367 = arith.addf %325, %366 : vector<1x1xf32>
    %368 = arith.addf %367, %353 : vector<1x1xf32>
    %cst_101 = arith.constant dense<0xFF800000> : vector<1xf32>
    %369 = vector.multi_reduction <maximumf>, %368, %cst_101 [1] : vector<1x1xf32> to vector<1xf32>
    %370 = vector.shape_cast %369 : vector<1xf32> to vector<1x1xf32>
    %371 = arith.subf %368, %370 : vector<1x1xf32>
    %372 = math.exp %371 : vector<1x1xf32>
    %cst_102 = arith.constant dense<0.000000e+00> : vector<1xf32>
    %373 = vector.multi_reduction <add>, %372, %cst_102 [1] : vector<1x1xf32> to vector<1xf32>
    %374 = vector.shape_cast %373 : vector<1xf32> to vector<1x1xf32>
    %375 = math.log %374 : vector<1x1xf32>
    %376 = arith.addf %370, %375 : vector<1x1xf32>
    %cst_103 = arith.constant 0.000000e+00 : f32
    %377 = vector.broadcast %cst_103 : f32 to vector<1x1xf32>
    %378 = arith.subf %377, %376 : vector<1x1xf32>
    %379 = arith.addf %378, %353 : vector<1x1xf32>
    %380 = arith.addf %325, %366 : vector<1x1xf32>
    %381 = arith.addf %380, %379 : vector<1x1xf32>
    %cst_104 = arith.constant dense<0xFF800000> : vector<1xf32>
    %382 = vector.multi_reduction <maximumf>, %381, %cst_104 [0] : vector<1x1xf32> to vector<1xf32>
    %383 = vector.shape_cast %382 : vector<1xf32> to vector<1x1xf32>
    %384 = arith.subf %381, %383 : vector<1x1xf32>
    %385 = math.exp %384 : vector<1x1xf32>
    %cst_105 = arith.constant dense<0.000000e+00> : vector<1xf32>
    %386 = vector.multi_reduction <add>, %385, %cst_105 [0] : vector<1x1xf32> to vector<1xf32>
    %387 = vector.shape_cast %386 : vector<1xf32> to vector<1x1xf32>
    %388 = math.log %387 : vector<1x1xf32>
    %389 = arith.addf %383, %388 : vector<1x1xf32>
    %cst_106 = arith.constant 0.000000e+00 : f32
    %390 = vector.broadcast %cst_106 : f32 to vector<1x1xf32>
    %391 = arith.subf %390, %389 : vector<1x1xf32>
    %392 = arith.addf %391, %366 : vector<1x1xf32>
    %393 = arith.addf %325, %392 : vector<1x1xf32>
    %394 = arith.addf %393, %379 : vector<1x1xf32>
    %cst_107 = arith.constant dense<0xFF800000> : vector<1xf32>
    %395 = vector.multi_reduction <maximumf>, %394, %cst_107 [1] : vector<1x1xf32> to vector<1xf32>
    %396 = vector.shape_cast %395 : vector<1xf32> to vector<1x1xf32>
    %397 = arith.subf %394, %396 : vector<1x1xf32>
    %398 = math.exp %397 : vector<1x1xf32>
    %cst_108 = arith.constant dense<0.000000e+00> : vector<1xf32>
    %399 = vector.multi_reduction <add>, %398, %cst_108 [1] : vector<1x1xf32> to vector<1xf32>
    %400 = vector.shape_cast %399 : vector<1xf32> to vector<1x1xf32>
    %401 = math.log %400 : vector<1x1xf32>
    %402 = arith.addf %396, %401 : vector<1x1xf32>
    %cst_109 = arith.constant 0.000000e+00 : f32
    %403 = vector.broadcast %cst_109 : f32 to vector<1x1xf32>
    %404 = arith.subf %403, %402 : vector<1x1xf32>
    %405 = arith.addf %404, %379 : vector<1x1xf32>
    %406 = arith.addf %325, %392 : vector<1x1xf32>
    %407 = arith.addf %406, %405 : vector<1x1xf32>
    %cst_110 = arith.constant dense<0xFF800000> : vector<1xf32>
    %408 = vector.multi_reduction <maximumf>, %407, %cst_110 [0] : vector<1x1xf32> to vector<1xf32>
    %409 = vector.shape_cast %408 : vector<1xf32> to vector<1x1xf32>
    %410 = arith.subf %407, %409 : vector<1x1xf32>
    %411 = math.exp %410 : vector<1x1xf32>
    %cst_111 = arith.constant dense<0.000000e+00> : vector<1xf32>
    %412 = vector.multi_reduction <add>, %411, %cst_111 [0] : vector<1x1xf32> to vector<1xf32>
    %413 = vector.shape_cast %412 : vector<1xf32> to vector<1x1xf32>
    %414 = math.log %413 : vector<1x1xf32>
    %415 = arith.addf %409, %414 : vector<1x1xf32>
    %cst_112 = arith.constant 0.000000e+00 : f32
    %416 = vector.broadcast %cst_112 : f32 to vector<1x1xf32>
    %417 = arith.subf %416, %415 : vector<1x1xf32>
    %418 = arith.addf %417, %392 : vector<1x1xf32>
    %419 = arith.addf %325, %418 : vector<1x1xf32>
    %420 = arith.addf %419, %405 : vector<1x1xf32>
    %cst_113 = arith.constant dense<0xFF800000> : vector<1xf32>
    %421 = vector.multi_reduction <maximumf>, %420, %cst_113 [1] : vector<1x1xf32> to vector<1xf32>
    %422 = vector.shape_cast %421 : vector<1xf32> to vector<1x1xf32>
    %423 = arith.subf %420, %422 : vector<1x1xf32>
    %424 = math.exp %423 : vector<1x1xf32>
    %cst_114 = arith.constant dense<0.000000e+00> : vector<1xf32>
    %425 = vector.multi_reduction <add>, %424, %cst_114 [1] : vector<1x1xf32> to vector<1xf32>
    %426 = vector.shape_cast %425 : vector<1xf32> to vector<1x1xf32>
    %427 = math.log %426 : vector<1x1xf32>
    %428 = arith.addf %422, %427 : vector<1x1xf32>
    %cst_115 = arith.constant 0.000000e+00 : f32
    %429 = vector.broadcast %cst_115 : f32 to vector<1x1xf32>
    %430 = arith.subf %429, %428 : vector<1x1xf32>
    %431 = arith.addf %430, %405 : vector<1x1xf32>
    %432 = arith.addf %325, %418 : vector<1x1xf32>
    %433 = arith.addf %432, %431 : vector<1x1xf32>
    %cst_116 = arith.constant dense<0xFF800000> : vector<1xf32>
    %434 = vector.multi_reduction <maximumf>, %433, %cst_116 [0] : vector<1x1xf32> to vector<1xf32>
    %435 = vector.shape_cast %434 : vector<1xf32> to vector<1x1xf32>
    %436 = arith.subf %433, %435 : vector<1x1xf32>
    %437 = math.exp %436 : vector<1x1xf32>
    %cst_117 = arith.constant dense<0.000000e+00> : vector<1xf32>
    %438 = vector.multi_reduction <add>, %437, %cst_117 [0] : vector<1x1xf32> to vector<1xf32>
    %439 = vector.shape_cast %438 : vector<1xf32> to vector<1x1xf32>
    %440 = math.log %439 : vector<1x1xf32>
    %441 = arith.addf %435, %440 : vector<1x1xf32>
    %cst_118 = arith.constant 0.000000e+00 : f32
    %442 = vector.broadcast %cst_118 : f32 to vector<1x1xf32>
    %443 = arith.subf %442, %441 : vector<1x1xf32>
    %444 = arith.addf %443, %418 : vector<1x1xf32>
    %445 = arith.addf %325, %444 : vector<1x1xf32>
    %446 = arith.addf %445, %431 : vector<1x1xf32>
    %cst_119 = arith.constant dense<0xFF800000> : vector<1xf32>
    %447 = vector.multi_reduction <maximumf>, %446, %cst_119 [1] : vector<1x1xf32> to vector<1xf32>
    %448 = vector.shape_cast %447 : vector<1xf32> to vector<1x1xf32>
    %449 = arith.subf %446, %448 : vector<1x1xf32>
    %450 = math.exp %449 : vector<1x1xf32>
    %cst_120 = arith.constant dense<0.000000e+00> : vector<1xf32>
    %451 = vector.multi_reduction <add>, %450, %cst_120 [1] : vector<1x1xf32> to vector<1xf32>
    %452 = vector.shape_cast %451 : vector<1xf32> to vector<1x1xf32>
    %453 = math.log %452 : vector<1x1xf32>
    %454 = arith.addf %448, %453 : vector<1x1xf32>
    %cst_121 = arith.constant 0.000000e+00 : f32
    %455 = vector.broadcast %cst_121 : f32 to vector<1x1xf32>
    %456 = arith.subf %455, %454 : vector<1x1xf32>
    %457 = arith.addf %456, %431 : vector<1x1xf32>
    %458 = arith.addf %325, %444 : vector<1x1xf32>
    %459 = arith.addf %458, %457 : vector<1x1xf32>
    %cst_122 = arith.constant dense<0xFF800000> : vector<1xf32>
    %460 = vector.multi_reduction <maximumf>, %459, %cst_122 [0] : vector<1x1xf32> to vector<1xf32>
    %461 = vector.shape_cast %460 : vector<1xf32> to vector<1x1xf32>
    %462 = arith.subf %459, %461 : vector<1x1xf32>
    %463 = math.exp %462 : vector<1x1xf32>
    %cst_123 = arith.constant dense<0.000000e+00> : vector<1xf32>
    %464 = vector.multi_reduction <add>, %463, %cst_123 [0] : vector<1x1xf32> to vector<1xf32>
    %465 = vector.shape_cast %464 : vector<1xf32> to vector<1x1xf32>
    %466 = math.log %465 : vector<1x1xf32>
    %467 = arith.addf %461, %466 : vector<1x1xf32>
    %cst_124 = arith.constant 0.000000e+00 : f32
    %468 = vector.broadcast %cst_124 : f32 to vector<1x1xf32>
    %469 = arith.subf %468, %467 : vector<1x1xf32>
    %470 = arith.addf %469, %444 : vector<1x1xf32>
    %471 = arith.addf %325, %470 : vector<1x1xf32>
    %472 = arith.addf %471, %457 : vector<1x1xf32>
    %cst_125 = arith.constant dense<0xFF800000> : vector<1xf32>
    %473 = vector.multi_reduction <maximumf>, %472, %cst_125 [1] : vector<1x1xf32> to vector<1xf32>
    %474 = vector.shape_cast %473 : vector<1xf32> to vector<1x1xf32>
    %475 = arith.subf %472, %474 : vector<1x1xf32>
    %476 = math.exp %475 : vector<1x1xf32>
    %cst_126 = arith.constant dense<0.000000e+00> : vector<1xf32>
    %477 = vector.multi_reduction <add>, %476, %cst_126 [1] : vector<1x1xf32> to vector<1xf32>
    %478 = vector.shape_cast %477 : vector<1xf32> to vector<1x1xf32>
    %479 = math.log %478 : vector<1x1xf32>
    %480 = arith.addf %474, %479 : vector<1x1xf32>
    %cst_127 = arith.constant 0.000000e+00 : f32
    %481 = vector.broadcast %cst_127 : f32 to vector<1x1xf32>
    %482 = arith.subf %481, %480 : vector<1x1xf32>
    %483 = arith.addf %482, %457 : vector<1x1xf32>
    %484 = arith.addf %325, %470 : vector<1x1xf32>
    %485 = arith.addf %484, %483 : vector<1x1xf32>
    %cst_128 = arith.constant dense<0xFF800000> : vector<1xf32>
    %486 = vector.multi_reduction <maximumf>, %485, %cst_128 [0] : vector<1x1xf32> to vector<1xf32>
    %487 = vector.shape_cast %486 : vector<1xf32> to vector<1x1xf32>
    %488 = arith.subf %485, %487 : vector<1x1xf32>
    %489 = math.exp %488 : vector<1x1xf32>
    %cst_129 = arith.constant dense<0.000000e+00> : vector<1xf32>
    %490 = vector.multi_reduction <add>, %489, %cst_129 [0] : vector<1x1xf32> to vector<1xf32>
    %491 = vector.shape_cast %490 : vector<1xf32> to vector<1x1xf32>
    %492 = math.log %491 : vector<1x1xf32>
    %493 = arith.addf %487, %492 : vector<1x1xf32>
    %cst_130 = arith.constant 0.000000e+00 : f32
    %494 = vector.broadcast %cst_130 : f32 to vector<1x1xf32>
    %495 = arith.subf %494, %493 : vector<1x1xf32>
    %496 = arith.addf %495, %470 : vector<1x1xf32>
    %497 = arith.addf %325, %496 : vector<1x1xf32>
    %498 = arith.addf %497, %483 : vector<1x1xf32>
    %cst_131 = arith.constant dense<0xFF800000> : vector<1xf32>
    %499 = vector.multi_reduction <maximumf>, %498, %cst_131 [1] : vector<1x1xf32> to vector<1xf32>
    %500 = vector.shape_cast %499 : vector<1xf32> to vector<1x1xf32>
    %501 = arith.subf %498, %500 : vector<1x1xf32>
    %502 = math.exp %501 : vector<1x1xf32>
    %cst_132 = arith.constant dense<0.000000e+00> : vector<1xf32>
    %503 = vector.multi_reduction <add>, %502, %cst_132 [1] : vector<1x1xf32> to vector<1xf32>
    %504 = vector.shape_cast %503 : vector<1xf32> to vector<1x1xf32>
    %505 = math.log %504 : vector<1x1xf32>
    %506 = arith.addf %500, %505 : vector<1x1xf32>
    %cst_133 = arith.constant 0.000000e+00 : f32
    %507 = vector.broadcast %cst_133 : f32 to vector<1x1xf32>
    %508 = arith.subf %507, %506 : vector<1x1xf32>
    %509 = arith.addf %508, %483 : vector<1x1xf32>
    %510 = arith.addf %325, %496 : vector<1x1xf32>
    %511 = arith.addf %510, %509 : vector<1x1xf32>
    %cst_134 = arith.constant dense<0xFF800000> : vector<1xf32>
    %512 = vector.multi_reduction <maximumf>, %511, %cst_134 [0] : vector<1x1xf32> to vector<1xf32>
    %513 = vector.shape_cast %512 : vector<1xf32> to vector<1x1xf32>
    %514 = arith.subf %511, %513 : vector<1x1xf32>
    %515 = math.exp %514 : vector<1x1xf32>
    %cst_135 = arith.constant dense<0.000000e+00> : vector<1xf32>
    %516 = vector.multi_reduction <add>, %515, %cst_135 [0] : vector<1x1xf32> to vector<1xf32>
    %517 = vector.shape_cast %516 : vector<1xf32> to vector<1x1xf32>
    %518 = math.log %517 : vector<1x1xf32>
    %519 = arith.addf %513, %518 : vector<1x1xf32>
    %cst_136 = arith.constant 0.000000e+00 : f32
    %520 = vector.broadcast %cst_136 : f32 to vector<1x1xf32>
    %521 = arith.subf %520, %519 : vector<1x1xf32>
    %522 = arith.addf %521, %496 : vector<1x1xf32>
    %523 = arith.addf %325, %522 : vector<1x1xf32>
    %524 = arith.addf %523, %509 : vector<1x1xf32>
    %cst_137 = arith.constant dense<0xFF800000> : vector<1xf32>
    %525 = vector.multi_reduction <maximumf>, %524, %cst_137 [1] : vector<1x1xf32> to vector<1xf32>
    %526 = vector.shape_cast %525 : vector<1xf32> to vector<1x1xf32>
    %527 = arith.subf %524, %526 : vector<1x1xf32>
    %528 = math.exp %527 : vector<1x1xf32>
    %cst_138 = arith.constant dense<0.000000e+00> : vector<1xf32>
    %529 = vector.multi_reduction <add>, %528, %cst_138 [1] : vector<1x1xf32> to vector<1xf32>
    %530 = vector.shape_cast %529 : vector<1xf32> to vector<1x1xf32>
    %531 = math.log %530 : vector<1x1xf32>
    %532 = arith.addf %526, %531 : vector<1x1xf32>
    %cst_139 = arith.constant 0.000000e+00 : f32
    %533 = vector.broadcast %cst_139 : f32 to vector<1x1xf32>
    %534 = arith.subf %533, %532 : vector<1x1xf32>
    %535 = arith.addf %534, %509 : vector<1x1xf32>
    %536 = arith.addf %325, %522 : vector<1x1xf32>
    %537 = arith.addf %536, %535 : vector<1x1xf32>
    %cst_140 = arith.constant dense<0xFF800000> : vector<1xf32>
    %538 = vector.multi_reduction <maximumf>, %537, %cst_140 [0] : vector<1x1xf32> to vector<1xf32>
    %539 = vector.shape_cast %538 : vector<1xf32> to vector<1x1xf32>
    %540 = arith.subf %537, %539 : vector<1x1xf32>
    %541 = math.exp %540 : vector<1x1xf32>
    %cst_141 = arith.constant dense<0.000000e+00> : vector<1xf32>
    %542 = vector.multi_reduction <add>, %541, %cst_141 [0] : vector<1x1xf32> to vector<1xf32>
    %543 = vector.shape_cast %542 : vector<1xf32> to vector<1x1xf32>
    %544 = math.log %543 : vector<1x1xf32>
    %545 = arith.addf %539, %544 : vector<1x1xf32>
    %cst_142 = arith.constant 0.000000e+00 : f32
    %546 = vector.broadcast %cst_142 : f32 to vector<1x1xf32>
    %547 = arith.subf %546, %545 : vector<1x1xf32>
    %548 = arith.addf %547, %522 : vector<1x1xf32>
    %549 = arith.addf %325, %548 : vector<1x1xf32>
    %550 = arith.addf %549, %535 : vector<1x1xf32>
    %cst_143 = arith.constant dense<0xFF800000> : vector<1xf32>
    %551 = vector.multi_reduction <maximumf>, %550, %cst_143 [1] : vector<1x1xf32> to vector<1xf32>
    %552 = vector.shape_cast %551 : vector<1xf32> to vector<1x1xf32>
    %553 = arith.subf %550, %552 : vector<1x1xf32>
    %554 = math.exp %553 : vector<1x1xf32>
    %cst_144 = arith.constant dense<0.000000e+00> : vector<1xf32>
    %555 = vector.multi_reduction <add>, %554, %cst_144 [1] : vector<1x1xf32> to vector<1xf32>
    %556 = vector.shape_cast %555 : vector<1xf32> to vector<1x1xf32>
    %557 = math.log %556 : vector<1x1xf32>
    %558 = arith.addf %552, %557 : vector<1x1xf32>
    %cst_145 = arith.constant 0.000000e+00 : f32
    %559 = vector.broadcast %cst_145 : f32 to vector<1x1xf32>
    %560 = arith.subf %559, %558 : vector<1x1xf32>
    %561 = arith.addf %560, %535 : vector<1x1xf32>
    %562 = arith.addf %325, %548 : vector<1x1xf32>
    %563 = arith.addf %562, %561 : vector<1x1xf32>
    %cst_146 = arith.constant dense<0xFF800000> : vector<1xf32>
    %564 = vector.multi_reduction <maximumf>, %563, %cst_146 [0] : vector<1x1xf32> to vector<1xf32>
    %565 = vector.shape_cast %564 : vector<1xf32> to vector<1x1xf32>
    %566 = arith.subf %563, %565 : vector<1x1xf32>
    %567 = math.exp %566 : vector<1x1xf32>
    %cst_147 = arith.constant dense<0.000000e+00> : vector<1xf32>
    %568 = vector.multi_reduction <add>, %567, %cst_147 [0] : vector<1x1xf32> to vector<1xf32>
    %569 = vector.shape_cast %568 : vector<1xf32> to vector<1x1xf32>
    %570 = math.log %569 : vector<1x1xf32>
    %571 = arith.addf %565, %570 : vector<1x1xf32>
    %cst_148 = arith.constant 0.000000e+00 : f32
    %572 = vector.broadcast %cst_148 : f32 to vector<1x1xf32>
    %573 = arith.subf %572, %571 : vector<1x1xf32>
    %574 = arith.addf %573, %548 : vector<1x1xf32>
    %575 = arith.addf %325, %574 : vector<1x1xf32>
    %576 = arith.addf %575, %561 : vector<1x1xf32>
    %cst_149 = arith.constant dense<0xFF800000> : vector<1xf32>
    %577 = vector.multi_reduction <maximumf>, %576, %cst_149 [1] : vector<1x1xf32> to vector<1xf32>
    %578 = vector.shape_cast %577 : vector<1xf32> to vector<1x1xf32>
    %579 = arith.subf %576, %578 : vector<1x1xf32>
    %580 = math.exp %579 : vector<1x1xf32>
    %cst_150 = arith.constant dense<0.000000e+00> : vector<1xf32>
    %581 = vector.multi_reduction <add>, %580, %cst_150 [1] : vector<1x1xf32> to vector<1xf32>
    %582 = vector.shape_cast %581 : vector<1xf32> to vector<1x1xf32>
    %583 = math.log %582 : vector<1x1xf32>
    %584 = arith.addf %578, %583 : vector<1x1xf32>
    %cst_151 = arith.constant 0.000000e+00 : f32
    %585 = vector.broadcast %cst_151 : f32 to vector<1x1xf32>
    %586 = arith.subf %585, %584 : vector<1x1xf32>
    %587 = arith.addf %586, %561 : vector<1x1xf32>
    %588 = arith.addf %325, %574 : vector<1x1xf32>
    %589 = arith.addf %588, %587 : vector<1x1xf32>
    %590 = math.exp %589 : vector<1x1xf32>
    %cst_152 = arith.constant dense<0.000000e+00> : vector<1x32xf32>
    %591 = tpu.matmul %590, %318, %cst_152 {dimension_numbers = #tpu.dot_dimension_numbers<[1], [0], [0], [1], [0, 0, 1, 1], [], []>} : vector<1x1xf32>, vector<1x32xf32>, vector<1x32xf32> -> vector<1x32xf32>
    %c1_153 = arith.constant 1 : index
    %c0_154 = arith.constant 0 : index
    %c0_155 = arith.constant 0 : index
    %592 = vector.load %arg5[%c1_153, %c0_154, %c0_155] : memref<2x32x32xf32, #tpu.memory_space<vmem>>, vector<1x32x32xf32>
    %593 = vector.shape_cast %592 : vector<1x32x32xf32> to vector<32x32xf32>
    %cst_156 = arith.constant dense<0.000000e+00> : vector<1x32xf32>
    %594 = tpu.matmul %591, %593, %cst_156 {dimension_numbers = #tpu.dot_dimension_numbers<[1], [0], [0], [1], [0, 0, 1, 1], [], []>} : vector<1x32xf32>, vector<32x32xf32>, vector<1x32xf32> -> vector<1x32xf32>
    %595 = arith.addf %320, %594 : vector<1x32xf32>
    %cst_157 = arith.constant 0.000000e+00 : f32
    %596 = vector.broadcast %cst_157 : f32 to vector<1x32xf32>
    %597 = arith.maximumf %595, %596 : vector<1x32xf32>
    %c0_158 = arith.constant 0 : index
    %c0_159 = arith.constant 0 : index
    %598 = vector.load %arg7[%c0_158, %c0_159] : memref<32x128xf32, #tpu.memory_space<vmem>>, vector<32x128xf32>
    %cst_160 = arith.constant dense<0.000000e+00> : vector<1x128xf32>
    %599 = tpu.matmul %597, %598, %cst_160 {dimension_numbers = #tpu.dot_dimension_numbers<[1], [0], [0], [1], [0, 0, 1, 1], [], []>} : vector<1x32xf32>, vector<32x128xf32>, vector<1x128xf32> -> vector<1x128xf32>
    %c0_161 = arith.constant 0 : index
    %c0_162 = arith.constant 0 : index
    %600 = vector.load %arg8[%c0_161, %c0_162] : memref<1x128xf32, #tpu.memory_space<vmem>>, vector<1x128xf32>
    %601 = arith.addf %599, %600 : vector<1x128xf32>
    %602 = vector.shape_cast %601 : vector<1x128xf32> to vector<1x1x128xf32>
    %c0_163 = arith.constant 0 : index
    %c0_164 = arith.constant 0 : index
    %c0_165 = arith.constant 0 : index
    %603 = vector.load %arg9[%c0_163, %c0_164, %c0_165] : memref<1x1x128xf32, #tpu.memory_space<vmem>>, vector<1x1x128xf32>
    tpu.vector_store %arg9[%c0_163, %c0_164, %c0_165], %602 {strides = array<i32>} : memref<1x1x128xf32, #tpu.memory_space<vmem>>, vector<1x1x128xf32>,
    return
  }
  func.func @transform_0(%arg0: i32) -> (i32, i32, i32) {
    %c0_i32 = arith.constant 0 : i32
    %c0_i32_0 = arith.constant 0 : i32
    %c0_i32_1 = arith.constant 0 : i32
    return %arg0, %c0_i32, %c0_i32_0 : i32, i32, i32
  }
  func.func @transform_1(%arg0: i32) -> (i32, i32) {
    %c0_i32 = arith.constant 0 : i32
    %c0_i32_0 = arith.constant 0 : i32
    %c0_i32_1 = arith.constant 0 : i32
    return %c0_i32, %c0_i32_0 : i32, i32
  }
  func.func @transform_2(%arg0: i32) -> (i32, i32) {
    %c0_i32 = arith.constant 0 : i32
    %c0_i32_0 = arith.constant 0 : i32
    %c0_i32_1 = arith.constant 0 : i32
    return %c0_i32, %c0_i32_0 : i32, i32
  }
  func.func @transform_3(%arg0: i32) -> (i32, i32, i32) {
    %c0_i32 = arith.constant 0 : i32
    %c0_i32_0 = arith.constant 0 : i32
    %c0_i32_1 = arith.constant 0 : i32
    %c0_i32_2 = arith.constant 0 : i32
    return %c0_i32, %c0_i32_0, %c0_i32_1 : i32, i32, i32
  }
  func.func @transform_4(%arg0: i32) -> (i32, i32, i32) {
    %c0_i32 = arith.constant 0 : i32
    %c0_i32_0 = arith.constant 0 : i32
    %c0_i32_1 = arith.constant 0 : i32
    %c0_i32_2 = arith.constant 0 : i32
    return %c0_i32, %c0_i32_0, %c0_i32_1 : i32, i32, i32
  }
  func.func @transform_5(%arg0: i32) -> (i32, i32, i32) {
    %c0_i32 = arith.constant 0 : i32
    %c0_i32_0 = arith.constant 0 : i32
    %c0_i32_1 = arith.constant 0 : i32
    %c0_i32_2 = arith.constant 0 : i32
    return %c0_i32, %c0_i32_0, %c0_i32_1 : i32, i32, i32
  }
  func.func @transform_6(%arg0: i32) -> (i32, i32) {
    %c0_i32 = arith.constant 0 : i32
    %c0_i32_0 = arith.constant 0 : i32
    %c0_i32_1 = arith.constant 0 : i32
    return %c0_i32, %c0_i32_0 : i32, i32
  }
  func.func @transform_7(%arg0: i32) -> (i32, i32) {
    %c0_i32 = arith.constant 0 : i32
    %c0_i32_0 = arith.constant 0 : i32
    %c0_i32_1 = arith.constant 0 : i32
    return %c0_i32, %c0_i32_0 : i32, i32
  }
  func.func @transform_8(%arg0: i32) -> (i32, i32, i32) {
    %c0_i32 = arith.constant 0 : i32
    %c0_i32_0 = arith.constant 0 : i32
    %c0_i32_1 = arith.constant 0 : i32
    return %arg0, %c0_i32, %c0_i32_0 : i32, i32, i32
  }
}

</mosaic_0001>

<bundles_post_ra>
// kernel: tpu_custom_call.1
= control target key start
LH: loop header
LB: loop body
LE: loop exit
PB: predicated region body
PF: predicated region fallthrough
CT: control target
= control target key end

     0   :  { %13 = vsyncpa [#allocation3], 0  ;;  %s2178_s0 = inlined_call_operand.vmem [shape: f32[2,12,20], index: 0, kind: input, shape index: {}]   ;;  %s2179_s1 = inlined_call_operand.vmem [shape: f32[20,32], index: 1, kind: input, shape index: {}]   ;;  %s2180_s2 = inlined_call_operand.vmem [shape: f32[1,32], index: 2, kind: input, shape index: {}]   ;;  %s2181_s3 = inlined_call_operand.vmem [shape: f32[2,1,32], index: 3, kind: input, shape index: {}]   ;;  %s2182_s4 = inlined_call_operand.hbm [shape: f32[2,32,32], index: 4, kind: input, shape index: {}]   ;;  %s2183_s5 = inlined_call_operand.vmem [shape: f32[2,1,32], index: 5, kind: input, shape index: {}]   ;;  %s2184_s6 = inlined_call_operand.vmem [shape: f32[32,128], index: 6, kind: input, shape index: {}]   ;;  %s2185_s7 = inlined_call_operand.vmem [shape: f32[1,128], index: 7, kind: input, shape index: {}]   ;;  %s2186_s8 = inlined_call_operand.hbm [shape: f32[2,1,128], index: 8, kind: output, shape index: {}]  }
   0x1   :  { %14 = vsyncpa [#allocation4], 0 }
   0x2   :  { %16 = vsyncpa [#allocation4 + $0x1], 0  ;;  %s1940_s27 = smov 0   ;;  %s1942_s28 = smov 0  }
   0x3   :  { %s1944_s29 = smov 0   ;;  %s1946_s30 = smov 0  }
   0x4 LB: > { %s1961_s9 = sadd.s32 4294967295, %s1887_s30   ;;  %s1462_s10 = sadd.s32 4294967294, %s1887_s30   ;;  %s1887_s30 = sphi %s1946_s30, %s2194_s30   ;;  %s1883_s29 = sphi %s1944_s29, %s2193_s29   ;;  %s1879_s28 = sphi %s1942_s28, %s2192_s28   ;;  %s1875_s27 = sphi %s1940_s27, %s2191_s27  }
   0x5   : > { %s1965_s11 = sadd.s32 1, %s1887_s30   ;;  %s202_s12 = sadd.s32 1, %s1883_s29 }
   0x6   : > { %s199_s13 = ssub.s32 %s1887_s30, %s1965_s11  ;;  %p212_p0 = scmp.ne.s32.totalorder %s1883_s29, %s1879_s28 }
   0x7   : > { %p200_p1 = scmp.eq.s32.totalorder %s199_s13, 0  ;;  %p213_p2 = scmp.eq.s32.totalorder %s1961_s9, 1 }
   0x8   : > { %p218_p3 = scmp.ne.s32.totalorder %s1879_s28, %s1875_s27  ;;  %p219_p4 = scmp.eq.s32.totalorder %s1462_s10, 1 }
   0x9   : > { %s1976_s14 = scalar_select %p200_p1, %s1883_s29, %s202_s12  }
   0xa   : > { %p1978_p5 = por %p213_p2, %p212_p0  ;;  %p1982_p6 = por %p219_p4, %p218_p3 }
   0xb   : > { %p1463_p7 = scmp.ge.s32.totalorder %s1887_s30, 1  ;;  %p226_p8 = scmp.lt.s32.totalorder %s1887_s30, 3 }
   0xc   : > { %s2188_s16 = scalar_select %p1982_p6, 1, 0 }
   0xd   : > { %p1593_p9 = scmp.eq.s32.totalorder %s1961_s9, 0  ;;  %p1989_p10 = pnand %p1463_p7, %p226_p8 }
   0xe   : > { %s1889_s18 = smov [#allocation2]  }
   0xf   : > { %s247_s19 = sshll.u32 %s1889_s18, 4  ;;  %p1585_p11 = pneg %p1989_p10  ;;  %s248_s19 = int_to_ptr.vmem [resolvable:$true] %s247_s19 }
  0x10   : > { %s1808_s20 = scalar_lea.vmem %s248_s19, 1024  ;;  %p1816_p3 = scmp.lt.s32.totalorder %s248_s19, %s248_s19 }
  0x11   : > { %p1586_p12 = pnand %p1593_p9, %p1585_p11  ;;  %p1809_p0 = scmp.ne.s32.totalorder %s248_s19, %s1808_s20 }
  0x12   : > { %p1817_p4 = scmp.lt.s32.totalorder %s1808_s20, %s1808_s20 }
  0x13   : > { %p1799_p13 = pneg %p1586_p12 }
  0x14   : > { %p1818_p6 = por %p1817_p4, %p1816_p3 }
  0x15   : > { %p1811_p1 = pnand %p1809_p0, %p1799_p13 }
  0x17   : > { %p1812_p2 = pneg %p1811_p1 }
  0x19   : > { %p1819_p7 = pnand %p1818_p6, %p1812_p2 }
  0x1b   : > { %1822 = shalt.err (!%p1819_p7)
}
  0x1c   : > { %s1890_s21 = smov 128   ;;  %s1891_s22 = smov 8  }
  0x1d   : > { %1588 = dma.hbm_to_vmem [thread:$0]  (!%p1586_p12), %s2182_s4, 1024, %s248_s19, [#allocation3], %s1890_s21, %s1890_s21, %s1891_s22  }
  0x1e   : > { %280 = sbr.rel (%p1989_p10) target bundleno = 6094 (0x17ce), region = 52 }
  0x23   : > { %1866 = dma.done.wait (%p1593_p9), [#allocation3], 1024  }
  0x24   : > { %1868 = vsyncadd (%p1593_p9), [#allocation3], 4294966272  ;;  %p313_p8 = scmp.lt.s32.totalorder %s1961_s9, 1  ;;  %vm337_vm0 = vcmask 1043456   ;;  %vm330_vm1 = vcmask 162816   ;;  %v321_v1 = vld [vmem:[%s2179_s1 + $0x8] sm:$0xff] }
  0x25   : > { %v322_v0 = vld [vmem:[%s2179_s1 + $0x10] sm:$0xf]  ;;  %v320_v3 = vld [vmem:[%s2179_s1] sm:$0xff]  ;;  %v1892_v5 = vmov 0.0   ;;  %vm1893_vm2 = vmmov 0   ;;  %vm420_vm3 = vcmask 261120  }
  0x26   : > { %s314_s25 = scalar_select %p313_p8, %s1961_s9, 1  ;;  %1518 = vmatprep.subr.msk.mxu0 %vm337_vm0, %v322_v0  ;;  %1527 = vmatprep.subr.mxu1 %v1892_v5  ;;  %v1470_v6 = vld [vmem:[%s2180_s2] ss:$0 sm:$0xff]  ;;  %vm514_vm4 = vcmask 90112   ;;  %vm766_vm5 = vcmask 97280   ;;  %vm1149_vm6 = vcmask 1040384  }
  0x27   : > { %1519 = vmatpush3.msk.msra.mxu0 %vm337_vm0, %v322_v0  ;;  %1531 = vmatprep.mubr.msk.f32.mxu1 %vm1893_vm2, %v1892_v5  ;;  %v419_v13 = vld [vmem:[%s2181_s3] sm:$0x1]  ;;  %vm926_vm7 = vcmask 253952   ;;  %vm1145_vm8 = vcmask 7168   ;;  %s311_s12 = sand.u32 1, %s1879_s28   ;;  %s1486_s17 = sshll.u32 %s1961_s9, 4 }
  0x28   : > { %s1489_s26 = sshll.u32 %s314_s25, 4  ;;  %1520 = vmatprep.subr.mxu0 %v321_v1  ;;  %s312_s19 = scalar_lea.vmem [#allocation5], %s311_s12 }
  0x29   : > { %s317_s13 = scalar_lea.vmem %s2178_s0, %s1489_s26  ;;  %1521 = vmatpush3.msra.mxu0 %v321_v1  ;;  %s1395_s20 = sshll.u32 %s312_s19, 4  ;;  %s1396_s20 = int_to_ptr.vmem [resolvable:$true] %s1395_s20 }
  0x2a   : > { %v318_v2 = vld [vmem:[%s317_s13] sm:$0xff]  ;;  %v319_v4 = vld [vmem:[%s317_s13 + $0x8] sm:$0xf]  ;;  %1522 = vmatprep.subr.mxu0 %v320_v3  ;;  %s2143_s23 = scalar_lea.hbm %s2186_s8, %s1486_s17  ;;  %s1383_s24 = scalar_lea.sflag [#allocation4], %s311_s12 }
  0x2b   : > { %1524 = vmatprep.mubr.msk.f32.mxu0 %vm330_vm1, %v318_v2  ;;  %1523 = vmatpush3.msra.mxu0 %v320_v3  ;;  %s1823_s25 = scalar_lea.vmem %s1396_s20, 16  ;;  %s1894_s26 = smov [#allocation5]  }
  0x2c   : > { %1525 = vmatmul.mubr.msk.f32.vlgmr.msra.gmra.mxu0 %vm330_vm1, %v319_v4  ;;  %1534 = vmatprep.subr.mxu0 %v1892_v5  ;;  %p1824_p6 = scmp.ne.s32.totalorder %s1396_s20, %s1823_s25  ;;  %s1827_s9 = sshll.u32 %s1894_s26, 4  ;;  %s1828_s9 = int_to_ptr.vmem [resolvable:$false] %s1827_s9 }
  0x2d   : > { %1538 = vmatprep.mubr.msk.f32.mxu0 %vm1893_vm2, %v1892_v5  ;;  %s1829_s10 = scalar_lea.vmem %s1828_s9, 32  ;;  %p1830_p11 = scmp.lt.s32.totalorder %s1396_s20, %s1828_s9 }
  0x2e   : > { %p1825_p9 = pnand %p1824_p6, %p1978_p5  ;;  %p1831_p12 = scmp.lt.s32.totalorder %s1829_s10, %s1823_s25 }
  0x30   : > { %p1826_p10 = pneg %p1825_p9  ;;  %p1832_p13 = por %p1831_p12, %p1830_p11 }
  0x32   : > { %p1833_p0 = pnand %p1832_p13, %p1826_p10 }
  0xec   : > { %v1526_v7 = vpop.f32.mrf.mxu0 }
  0xed   : > { %v413_v8 = vadd.f32 %v1526_v7, %v1470_v6 }
  0xee   : > { %v407_v9 = vpop.f32.mrf.mxu0 }
  0xef   : > { %v417_v10 = vmax.f32 %v413_v8, 0.0  ;;  %v408_v11 = vadd.f32 %v1470_v6, %v407_v9 }
  0xf1   : > { %v416_v12 = vmax.f32 %v408_v11, 0.0  ;;  %1528 = vmatpush3.xpose.msk.msra.mxu1 %vm420_vm3, %v417_v10  ;;  %1535 = vmatpush3.msk.msra.mxu0 %vm337_vm0, %v417_v10 }
  0xf2   : > { %1536 = vmatprep.subr.mxu0 %v1892_v5  ;;  %1529 = vmatprep.subr.mxu1 %v1892_v5 }
  0xf3   : > { %1537 = vmatpush3.msra.mxu0 %v416_v12 }
  0xf4   : > { %1552 = vmatprep.subr.mxu0 %v1892_v5 }
  0xf5   : > { %1530 = vmatpush3.xpose.msk.msra.mxu1 %vm420_vm3, %v416_v12 }
  0xf6   : > { %1541 = vmatprep.subr.mxu1 %v1892_v5 }
  0xf8   : > { %1532 = vmatmul.mubr.msk.f32.vlgmr.msra.gmra.mxu1 %vm420_vm3, %v419_v13 }
  0xf9   : > { %1549 = vmatprep.mubr.msk.f32.mxu1 %vm1893_vm2, %v1892_v5 }
 0x1b8   : > { %v496_v14 = vpop.f32.mrf.mxu1 }
 0x1b9   : > { %v2044_v15 = vmul.f32 10.0, %v496_v14 }
 0x1ba   : > { %v1533_v16 = vpop.f32.mrf.mxu1 }
 0x1bb   : > { %v503_v17 = vsub.f32 %v2044_v15, %v2044_v15 }
 0x1bd   : > { %v504_v18 = vmul.f32 1.442695, %v503_v17 }
 0x1bf   : > { %1633 = vpow2.f32 %v504_v18 }
 0x1cc   : > { %v1634_v19 = vpop.eup %1633 }
 0x1cd   : > { %1635 = vlog2.f32 %v1634_v19 }
 0x1da   : > { %v1636_v20 = vpop.eup %1635 }
 0x1db   : > { %v508_v21 = vmul.f32 0.6931472, %v1636_v20 }
 0x1dd   : > { %v509_v22 = vadd.f32 %v508_v21, %v2044_v15 }
 0x1df   : > { %v510_v23 = vsub.f32 -2.4849067, %v509_v22 }
 0x1e1   : > { %v512_v24 = vadd.f32 %v510_v23, %v2044_v15 }
 0x1e3   : > { %v515_v25 = vsel %vm514_vm4, %v512_v24, -inf }
 0x1e4   : > { %516 = vmax.xlane.f32.xlu0 %v515_v25 }
 0x26d   : > { %v517_v26 = vpop.xlane.xlu0 %516 }
 0x26e   : > { %v518_v27 = vsub.f32 %v512_v24, %v517_v26 }
 0x270   : > { %v519_v28 = vmul.f32 1.442695, %v518_v27 }
 0x272   : > { %1637 = vpow2.f32 %v519_v28 }
 0x27f   : > { %v1638_v29 = vpop.eup %1637 }
 0x280   : > { %v521_v30 = vsel %vm514_vm4, %v1638_v29, 0.0 }
 0x281   : > { %522 = vadd.xlane.f32.xlu0 %v521_v30 }
 0x30a   : > { %v523_v31 = vpop.xlane.xlu0 %522 }
 0x30b   : > { %1639 = vlog2.f32 %v523_v31 }
 0x318   : > { %v1640_v32 = vpop.eup %1639 }
 0x319   : > { %v525_v33 = vmul.f32 0.6931472, %v1640_v32 }
 0x31b   : > { %v526_v34 = vadd.f32 %v525_v33, %v517_v26 }
 0x31d   : > { %v527_v35 = vsub.f32 0.0, %v526_v34 }
 0x31f   : > { %v529_v36 = vadd.f32 %v527_v35, %v512_v24 }
 0x321   : > { %v530_v37 = vsub.f32 %v529_v36, %v529_v36 }
 0x323   : > { %v531_v38 = vmul.f32 1.442695, %v530_v37 }
 0x325   : > { %1641 = vpow2.f32 %v531_v38 }
 0x332   : > { %v1642_v39 = vpop.eup %1641 }
 0x333   : > { %1643 = vlog2.f32 %v1642_v39 }
 0x340   : > { %v1644_v40 = vpop.eup %1643 }
 0x341   : > { %v535_v41 = vmul.f32 0.6931472, %v1644_v40 }
 0x343   : > { %v536_v42 = vadd.f32 %v535_v41, %v529_v36 }
 0x345   : > { %v537_v43 = vsub.f32 -2.4849067, %v536_v42 }
 0x347   : > { %v538_v44 = vadd.f32 %v537_v43, %v510_v23 }
 0x349   : > { %v539_v45 = vadd.f32 %v538_v44, %v2044_v15 }
 0x34b   : > { %v540_v46 = vadd.f32 %v539_v45, %v527_v35 }
 0x34d   : > { %v541_v47 = vsel %vm514_vm4, %v540_v46, -inf }
 0x34e   : > { %542 = vmax.xlane.f32.xlu1 %v541_v47 }
 0x3d7   : > { %v543_v48 = vpop.xlane.xlu1 %542 }
 0x3d8   : > { %v544_v49 = vsub.f32 %v540_v46, %v543_v48 }
 0x3da   : > { %v545_v50 = vmul.f32 1.442695, %v544_v49 }
 0x3dc   : > { %1645 = vpow2.f32 %v545_v50 }
 0x3e9   : > { %v1646_v51 = vpop.eup %1645 }
 0x3ea   : > { %v547_v52 = vsel %vm514_vm4, %v1646_v51, 0.0 }
 0x3eb   : > { %548 = vadd.xlane.f32.xlu1 %v547_v52 }
 0x474   : > { %v549_v53 = vpop.xlane.xlu1 %548 }
 0x475   : > { %1647 = vlog2.f32 %v549_v53 }
 0x482   : > { %v1648_v54 = vpop.eup %1647 }
 0x483   : > { %v551_v55 = vmul.f32 0.6931472, %v1648_v54 }
 0x485   : > { %v552_v56 = vadd.f32 %v551_v55, %v543_v48 }
 0x487   : > { %v553_v57 = vsub.f32 0.0, %v552_v56 }
 0x489   : > { %v554_v58 = vadd.f32 %v553_v57, %v527_v35 }
 0x48b   : > { %v555_v59 = vadd.f32 %v554_v58, %v539_v45 }
 0x48d   : > { %v556_v60 = vsub.f32 %v555_v59, %v555_v59 }
 0x48f   : > { %v557_v61 = vmul.f32 1.442695, %v556_v60 }
 0x491   : > { %1649 = vpow2.f32 %v557_v61 }
 0x49e   : > { %v1650_v62 = vpop.eup %1649 }
 0x49f   : > { %1651 = vlog2.f32 %v1650_v62 }
 0x4ac   : > { %v1652_v63 = vpop.eup %1651 }
 0x4ad   : > { %v561_v0 = vmul.f32 0.6931472, %v1652_v63 }
 0x4af   : > { %v562_v1 = vadd.f32 %v561_v0, %v555_v59 }
 0x4b1   : > { %v563_v2 = vsub.f32 -2.4849067, %v562_v1 }
 0x4b3   : > { %v564_v3 = vadd.f32 %v563_v2, %v538_v44 }
 0x4b5   : > { %v565_v4 = vadd.f32 %v564_v3, %v2044_v15 }
 0x4b7   : > { %v566_v6 = vadd.f32 %v565_v4, %v554_v58 }
 0x4b9   : > { %v567_v7 = vsel %vm514_vm4, %v566_v6, -inf }
 0x4ba   : > { %568 = vmax.xlane.f32.xlu0 %v567_v7 }
 0x543   : > { %v569_v8 = vpop.xlane.xlu0 %568 }
 0x544   : > { %v570_v9 = vsub.f32 %v566_v6, %v569_v8 }
 0x546   : > { %v571_v10 = vmul.f32 1.442695, %v570_v9 }
 0x548   : > { %1653 = vpow2.f32 %v571_v10 }
 0x555   : > { %v1654_v11 = vpop.eup %1653 }
 0x556   : > { %v573_v12 = vsel %vm514_vm4, %v1654_v11, 0.0 }
 0x557   : > { %574 = vadd.xlane.f32.xlu1 %v573_v12 }
 0x5e0   : > { %v575_v13 = vpop.xlane.xlu1 %574 }
 0x5e1   : > { %1655 = vlog2.f32 %v575_v13 }
 0x5ee   : > { %v1656_v14 = vpop.eup %1655 }
 0x5ef   : > { %v577_v16 = vmul.f32 0.6931472, %v1656_v14 }
 0x5f1   : > { %v578_v17 = vadd.f32 %v577_v16, %v569_v8 }
 0x5f3   : > { %v579_v18 = vsub.f32 0.0, %v578_v17 }
 0x5f5   : > { %v580_v19 = vadd.f32 %v579_v18, %v554_v58 }
 0x5f7   : > { %v581_v20 = vadd.f32 %v580_v19, %v565_v4 }
 0x5f9   : > { %v582_v21 = vsub.f32 %v581_v20, %v581_v20 }
 0x5fb   : > { %v583_v22 = vmul.f32 1.442695, %v582_v21 }
 0x5fd   : > { %1657 = vpow2.f32 %v583_v22 }
 0x60a   : > { %v1658_v23 = vpop.eup %1657 }
 0x60b   : > { %1659 = vlog2.f32 %v1658_v23 }
 0x618   : > { %v1660_v24 = vpop.eup %1659 }
 0x619   : > { %v587_v25 = vmul.f32 0.6931472, %v1660_v24 }
 0x61b   : > { %v588_v26 = vadd.f32 %v587_v25, %v581_v20 }
 0x61d   : > { %v589_v27 = vsub.f32 -2.4849067, %v588_v26 }
 0x61f   : > { %v590_v28 = vadd.f32 %v589_v27, %v564_v3 }
 0x621   : > { %v591_v29 = vadd.f32 %v590_v28, %v2044_v15 }
 0x623   : > { %v592_v30 = vadd.f32 %v591_v29, %v580_v19 }
 0x625   : > { %v593_v31 = vsel %vm514_vm4, %v592_v30, -inf }
 0x626   : > { %594 = vmax.xlane.f32.xlu0 %v593_v31 }
 0x6af   : > { %v595_v32 = vpop.xlane.xlu0 %594 }
 0x6b0   : > { %v596_v33 = vsub.f32 %v592_v30, %v595_v32 }
 0x6b2   : > { %v597_v34 = vmul.f32 1.442695, %v596_v33 }
 0x6b4   : > { %1661 = vpow2.f32 %v597_v34 }
 0x6c1   : > { %v1662_v35 = vpop.eup %1661 }
 0x6c2   : > { %v599_v36 = vsel %vm514_vm4, %v1662_v35, 0.0 }
 0x6c3   : > { %600 = vadd.xlane.f32.xlu1 %v599_v36 }
 0x74c   : > { %v601_v37 = vpop.xlane.xlu1 %600 }
 0x74d   : > { %1663 = vlog2.f32 %v601_v37 }
 0x75a   : > { %v1664_v38 = vpop.eup %1663 }
 0x75b   : > { %v603_v39 = vmul.f32 0.6931472, %v1664_v38 }
 0x75d   : > { %v604_v40 = vadd.f32 %v603_v39, %v595_v32 }
 0x75f   : > { %v605_v41 = vsub.f32 0.0, %v604_v40 }
 0x761   : > { %v606_v42 = vadd.f32 %v605_v41, %v580_v19 }
 0x763   : > { %v607_v43 = vadd.f32 %v606_v42, %v591_v29 }
 0x765   : > { %v608_v44 = vsub.f32 %v607_v43, %v607_v43 }
 0x767   : > { %v609_v45 = vmul.f32 1.442695, %v608_v44 }
 0x769   : > { %1665 = vpow2.f32 %v609_v45 }
 0x776   : > { %v1666_v46 = vpop.eup %1665 }
 0x777   : > { %1667 = vlog2.f32 %v1666_v46 }
 0x784   : > { %v1668_v47 = vpop.eup %1667 }
 0x785   : > { %v613_v48 = vmul.f32 0.6931472, %v1668_v47 }
 0x787   : > { %v614_v49 = vadd.f32 %v613_v48, %v607_v43 }
 0x789   : > { %v615_v50 = vsub.f32 -2.4849067, %v614_v49 }
 0x78b   : > { %v616_v51 = vadd.f32 %v615_v50, %v590_v28 }
 0x78d   : > { %v617_v52 = vadd.f32 %v616_v51, %v2044_v15 }
 0x78f   : > { %v618_v53 = vadd.f32 %v617_v52, %v606_v42 }
 0x791   : > { %v619_v54 = vsel %vm514_vm4, %v618_v53, -inf }
 0x792   : > { %620 = vmax.xlane.f32.xlu0 %v619_v54 }
 0x81b   : > { %v621_v55 = vpop.xlane.xlu0 %620 }
 0x81c   : > { %v622_v56 = vsub.f32 %v618_v53, %v621_v55 }
 0x81e   : > { %v623_v57 = vmul.f32 1.442695, %v622_v56 }
 0x820   : > { %1669 = vpow2.f32 %v623_v57 }
 0x82d   : > { %v1670_v58 = vpop.eup %1669 }
 0x82e   : > { %v625_v59 = vsel %vm514_vm4, %v1670_v58, 0.0 }
 0x82f   : > { %626 = vadd.xlane.f32.xlu1 %v625_v59 }
 0x8b8   : > { %v627_v60 = vpop.xlane.xlu1 %626 }
 0x8b9   : > { %1671 = vlog2.f32 %v627_v60 }
 0x8c6   : > { %v1672_v61 = vpop.eup %1671 }
 0x8c7   : > { %v629_v62 = vmul.f32 0.6931472, %v1672_v61 }
 0x8c9   : > { %v630_v63 = vadd.f32 %v629_v62, %v621_v55 }
 0x8cb   : > { %v631_v0 = vsub.f32 0.0, %v630_v63 }
 0x8cd   : > { %v632_v1 = vadd.f32 %v631_v0, %v606_v42 }
 0x8cf   : > { %v633_v2 = vadd.f32 %v632_v1, %v617_v52 }
 0x8d1   : > { %v634_v3 = vsub.f32 %v633_v2, %v633_v2 }
 0x8d3   : > { %v635_v4 = vmul.f32 1.442695, %v634_v3 }
 0x8d5   : > { %1673 = vpow2.f32 %v635_v4 }
 0x8e2   : > { %v1674_v6 = vpop.eup %1673 }
 0x8e3   : > { %1675 = vlog2.f32 %v1674_v6 }
 0x8f0   : > { %v1676_v7 = vpop.eup %1675 }
 0x8f1   : > { %v639_v8 = vmul.f32 0.6931472, %v1676_v7 }
 0x8f3   : > { %v640_v9 = vadd.f32 %v639_v8, %v633_v2 }
 0x8f5   : > { %v641_v10 = vsub.f32 -2.4849067, %v640_v9 }
 0x8f7   : > { %v642_v11 = vadd.f32 %v641_v10, %v616_v51 }
 0x8f9   : > { %v643_v12 = vadd.f32 %v642_v11, %v2044_v15 }
 0x8fb   : > { %v644_v13 = vadd.f32 %v643_v12, %v632_v1 }
 0x8fd   : > { %v645_v14 = vsel %vm514_vm4, %v644_v13, -inf }
 0x8fe   : > { %646 = vmax.xlane.f32.xlu0 %v645_v14 }
 0x987   : > { %v647_v16 = vpop.xlane.xlu0 %646 }
 0x988   : > { %v648_v17 = vsub.f32 %v644_v13, %v647_v16 }
 0x98a   : > { %v649_v18 = vmul.f32 1.442695, %v648_v17 }
 0x98c   : > { %1677 = vpow2.f32 %v649_v18 }
 0x999   : > { %v1678_v19 = vpop.eup %1677 }
 0x99a   : > { %v651_v20 = vsel %vm514_vm4, %v1678_v19, 0.0 }
 0x99b   : > { %652 = vadd.xlane.f32.xlu1 %v651_v20 }
 0xa24   : > { %v653_v21 = vpop.xlane.xlu1 %652 }
 0xa25   : > { %1679 = vlog2.f32 %v653_v21 }
 0xa32   : > { %v1680_v22 = vpop.eup %1679 }
 0xa33   : > { %v655_v23 = vmul.f32 0.6931472, %v1680_v22 }
 0xa35   : > { %v656_v24 = vadd.f32 %v655_v23, %v647_v16 }
 0xa37   : > { %v657_v25 = vsub.f32 0.0, %v656_v24 }
 0xa39   : > { %v658_v26 = vadd.f32 %v657_v25, %v632_v1 }
 0xa3b   : > { %v659_v27 = vadd.f32 %v658_v26, %v643_v12 }
 0xa3d   : > { %v660_v28 = vsub.f32 %v659_v27, %v659_v27 }
 0xa3f   : > { %v661_v29 = vmul.f32 1.442695, %v660_v28 }
 0xa41   : > { %1681 = vpow2.f32 %v661_v29 }
 0xa4e   : > { %v1682_v30 = vpop.eup %1681 }
 0xa4f   : > { %1683 = vlog2.f32 %v1682_v30 }
 0xa5c   : > { %v1684_v31 = vpop.eup %1683 }
 0xa5d   : > { %v665_v32 = vmul.f32 0.6931472, %v1684_v31 }
 0xa5f   : > { %v666_v33 = vadd.f32 %v665_v32, %v659_v27 }
 0xa61   : > { %v667_v34 = vsub.f32 -2.4849067, %v666_v33 }
 0xa63   : > { %v668_v35 = vadd.f32 %v667_v34, %v642_v11 }
 0xa65   : > { %v669_v36 = vadd.f32 %v668_v35, %v2044_v15 }
 0xa67   : > { %v670_v37 = vadd.f32 %v669_v36, %v658_v26 }
 0xa69   : > { %v671_v38 = vsel %vm514_vm4, %v670_v37, -inf }
 0xa6a   : > { %672 = vmax.xlane.f32.xlu0 %v671_v38 }
 0xaf3   : > { %v673_v39 = vpop.xlane.xlu0 %672 }
 0xaf4   : > { %v674_v40 = vsub.f32 %v670_v37, %v673_v39 }
 0xaf6   : > { %v675_v41 = vmul.f32 1.442695, %v674_v40 }
 0xaf8   : > { %1685 = vpow2.f32 %v675_v41 }
 0xb05   : > { %v1686_v42 = vpop.eup %1685 }
 0xb06   : > { %v677_v43 = vsel %vm514_vm4, %v1686_v42, 0.0 }
 0xb07   : > { %678 = vadd.xlane.f32.xlu1 %v677_v43 }
 0xb90   : > { %v679_v44 = vpop.xlane.xlu1 %678 }
 0xb91   : > { %1687 = vlog2.f32 %v679_v44 }
 0xb9e   : > { %v1688_v45 = vpop.eup %1687 }
 0xb9f   : > { %v681_v46 = vmul.f32 0.6931472, %v1688_v45 }
 0xba1   : > { %v682_v47 = vadd.f32 %v681_v46, %v673_v39 }
 0xba3   : > { %v683_v48 = vsub.f32 0.0, %v682_v47 }
 0xba5   : > { %v684_v49 = vadd.f32 %v683_v48, %v658_v26 }
 0xba7   : > { %v685_v50 = vadd.f32 %v684_v49, %v669_v36 }
 0xba9   : > { %v686_v51 = vsub.f32 %v685_v50, %v685_v50 }
 0xbab   : > { %v687_v52 = vmul.f32 1.442695, %v686_v51  ;;  %v845_v51 = vld [vmem:[#allocation2 + $0x18] sm:$0xff] }
 0xbac   : > { %1542 = vmatpush3.msra.mxu1 %v845_v51 }
 0xbad   : > { %1689 = vpow2.f32 %v687_v52  ;;  %v844_v52 = vld [vmem:[#allocation2 + $0x10] sm:$0xff]  ;;  %1543 = vmatprep.subr.mxu1 %v1892_v5 }
 0xbae   : > { %1544 = vmatpush3.msra.mxu1 %v844_v52 }
 0xbaf   : > { %1545 = vmatprep.subr.mxu1 %v1892_v5 }
 0xbba   : > { %v1690_v53 = vpop.eup %1689 }
 0xbbb   : > { %1691 = vlog2.f32 %v1690_v53  ;;  %v843_v53 = vld [vmem:[#allocation2 + $0x8] sm:$0xff] }
 0xbbc   : > { %1546 = vmatpush3.msra.mxu1 %v843_v53 }
 0xbbd   : > { %1547 = vmatprep.subr.mxu1 %v1892_v5 }
 0xbc8   : > { %v1692_v54 = vpop.eup %1691 }
 0xbc9   : > { %v691_v55 = vmul.f32 0.6931472, %v1692_v54 }
 0xbcb   : > { %v692_v56 = vadd.f32 %v691_v55, %v685_v50 }
 0xbcd   : > { %v693_v57 = vsub.f32 -2.4849067, %v692_v56 }
 0xbcf   : > { %v694_v58 = vadd.f32 %v693_v57, %v668_v35 }
 0xbd1   : > { %v695_v59 = vadd.f32 %v694_v58, %v2044_v15 }
 0xbd3   : > { %v696_v60 = vadd.f32 %v695_v59, %v684_v49 }
 0xbd5   : > { %v697_v61 = vsel %vm514_vm4, %v696_v60, -inf }
 0xbd6   : > { %698 = vmax.xlane.f32.xlu0 %v697_v61 }
 0xc5f   : > { %v699_v62 = vpop.xlane.xlu0 %698 }
 0xc60   : > { %v700_v63 = vsub.f32 %v696_v60, %v699_v62 }
 0xc62   : > { %v701_v0 = vmul.f32 1.442695, %v700_v63 }
 0xc64   : > { %1693 = vpow2.f32 %v701_v0 }
 0xc71   : > { %v1694_v1 = vpop.eup %1693 }
 0xc72   : > { %v703_v2 = vsel %vm514_vm4, %v1694_v1, 0.0  ;;  %v418_v1 = vld [vmem:[%s2183_s5] sm:$0x1] }
 0xc73   : > { %704 = vadd.xlane.f32.xlu1 %v703_v2 }
 0xcfc   : > { %v705_v3 = vpop.xlane.xlu1 %704 }
 0xcfd   : > { %1695 = vlog2.f32 %v705_v3 }
 0xd0a   : > { %v1696_v4 = vpop.eup %1695 }
 0xd0b   : > { %v707_v6 = vmul.f32 0.6931472, %v1696_v4 }
 0xd0d   : > { %v708_v7 = vadd.f32 %v707_v6, %v699_v62  ;;  %v842_v62 = vld [vmem:[#allocation2] sm:$0xff] }
 0xd0e   : > { %1548 = vmatpush3.msra.mxu1 %v842_v62  ;;  %v1481_v6 = vld [vmem:[%s2181_s3 + $0x1] sm:$0x1] }
 0xd0f   : > { %v709_v8 = vsub.f32 0.0, %v708_v7  ;;  %1568 = vmatprep.subr.mxu1 %v1892_v5 }
 0xd11   : > { %v710_v9 = vadd.f32 %v709_v8, %v684_v49 }
 0xd13   : > { %v711_v10 = vadd.f32 %v710_v9, %v695_v59 }
 0xd15   : > { %v712_v11 = vsub.f32 %v711_v10, %v711_v10 }
 0xd17   : > { %v713_v12 = vmul.f32 1.442695, %v712_v11 }
 0xd19   : > { %1697 = vpow2.f32 %v713_v12 }
 0xd26   : > { %v1698_v13 = vpop.eup %1697 }
 0xd27   : > { %1699 = vlog2.f32 %v1698_v13 }
 0xd34   : > { %v1700_v14 = vpop.eup %1699 }
 0xd35   : > { %v717_v16 = vmul.f32 0.6931472, %v1700_v14 }
 0xd37   : > { %v718_v17 = vadd.f32 %v717_v16, %v711_v10 }
 0xd39   : > { %v719_v18 = vsub.f32 -2.4849067, %v718_v17 }
 0xd3b   : > { %v720_v19 = vadd.f32 %v719_v18, %v694_v58 }
 0xd3d   : > { %v721_v20 = vadd.f32 %v720_v19, %v2044_v15 }
 0xd3f   : > { %v722_v21 = vadd.f32 %v721_v20, %v710_v9 }
 0xd41   : > { %v723_v22 = vsel %vm514_vm4, %v722_v21, -inf }
 0xd42   : > { %724 = vmax.xlane.f32.xlu0 %v723_v22 }
 0xdcb   : > { %v725_v23 = vpop.xlane.xlu0 %724 }
 0xdcc   : > { %v726_v24 = vsub.f32 %v722_v21, %v725_v23 }
 0xdce   : > { %v727_v25 = vmul.f32 1.442695, %v726_v24 }
 0xdd0   : > { %1701 = vpow2.f32 %v727_v25 }
 0xddd   : > { %v1702_v26 = vpop.eup %1701 }
 0xdde   : > { %v729_v27 = vsel %vm514_vm4, %v1702_v26, 0.0 }
 0xddf   : > { %730 = vadd.xlane.f32.xlu1 %v729_v27 }
 0xe68   : > { %v731_v28 = vpop.xlane.xlu1 %730 }
 0xe69   : > { %1703 = vlog2.f32 %v731_v28 }
 0xe76   : > { %v1704_v29 = vpop.eup %1703 }
 0xe77   : > { %v733_v30 = vmul.f32 0.6931472, %v1704_v29 }
 0xe79   : > { %v734_v31 = vadd.f32 %v733_v30, %v725_v23 }
 0xe7b   : > { %v735_v32 = vsub.f32 0.0, %v734_v31 }
 0xe7d   : > { %v736_v33 = vadd.f32 %v735_v32, %v710_v9 }
 0xe7f   : > { %v737_v34 = vadd.f32 %v736_v33, %v721_v20 }
 0xe81   : > { %v738_v35 = vsub.f32 %v737_v34, %v737_v34 }
 0xe83   : > { %v739_v36 = vmul.f32 1.442695, %v738_v35 }
 0xe85   : > { %1705 = vpow2.f32 %v739_v36 }
 0xe92   : > { %v1706_v37 = vpop.eup %1705 }
 0xe93   : > { %1707 = vlog2.f32 %v1706_v37 }
 0xea0   : > { %v1708_v38 = vpop.eup %1707 }
 0xea1   : > { %v743_v39 = vmul.f32 0.6931472, %v1708_v38 }
 0xea3   : > { %v744_v40 = vadd.f32 %v743_v39, %v737_v34 }
 0xea5   : > { %v745_v41 = vsub.f32 -2.4849067, %v744_v40 }
 0xea7   : > { %v746_v42 = vadd.f32 %v745_v41, %v720_v19 }
 0xea9   : > { %v747_v43 = vadd.f32 %v746_v42, %v2044_v15 }
 0xeab   : > { %v748_v44 = vadd.f32 %v747_v43, %v736_v33 }
 0xead   : > { %v749_v45 = vsel %vm514_vm4, %v748_v44, -inf }
 0xeae   : > { %750 = vmax.xlane.f32.xlu0 %v749_v45 }
 0xf37   : > { %v751_v46 = vpop.xlane.xlu0 %750 }
 0xf38   : > { %v752_v47 = vsub.f32 %v748_v44, %v751_v46 }
 0xf3a   : > { %v753_v48 = vmul.f32 1.442695, %v752_v47 }
 0xf3c   : > { %1709 = vpow2.f32 %v753_v48 }
 0xf49   : > { %v1710_v49 = vpop.eup %1709 }
 0xf4a   : > { %v755_v50 = vsel %vm514_vm4, %v1710_v49, 0.0 }
 0xf4b   : > { %756 = vadd.xlane.f32.xlu1 %v755_v50 }
 0xfd4   : > { %v757_v15 = vpop.xlane.xlu1 %756 }
 0xfd5   : > { %1711 = vlog2.f32 %v757_v15 }
 0xfe2   : > { %v1712_v54 = vpop.eup %1711 }
 0xfe3   : > { %v759_v55 = vmul.f32 0.6931472, %v1712_v54 }
 0xfe5   : > { %v760_v56 = vadd.f32 %v759_v55, %v751_v46 }
 0xfe7   : > { %v761_v57 = vsub.f32 0.0, %v760_v56 }
 0xfe9   : > { %v762_v58 = vadd.f32 %v761_v57, %v736_v33 }
 0xfeb   : > { %v763_v59 = vadd.f32 %v762_v58, %v747_v43 }
 0xfed   : > { %v764_v60 = vmul.f32 1.442695, %v763_v59 }
 0xfef   : > { %1713 = vpow2.f32 %v764_v60 }
 0xffc   : > { %v1714_v61 = vpop.eup %1713 }
 0xffd   : > { %1539 = vmatmul.mubr.msk.f32.vlgmr.msra.gmra.mxu0 %vm766_vm5, %v1714_v61 }
 0xffe   : > { %1554 = vmatprep.mubr.msk.f32.mxu0 %vm1893_vm2, %v1892_v5 }
0x10bd   : > { %v838_v63 = vpop.f32.mrf.mxu0 }
0x10be   : > { %1550 = vmatmul.mubr.msk.f32.vlgmr.msra.gmra.mxu1 %vm420_vm3, %v838_v63 }
0x10bf   : > { %v1540_v0 = vpop.f32.mrf.mxu0  ;;  %1576 = vmatprep.mubr.msk.f32.mxu1 %vm1893_vm2, %v1892_v5 }
0x117e   : > { %v915_v2 = vpop.f32.mrf.mxu1 }
0x117f   : > { %v919_v3 = vadd.f32 %v915_v2, %v418_v1 }
0x1180   : > { %v1551_v4 = vpop.f32.mrf.mxu1 }
0x1181   : > { %v920_v7 = vmax.f32 %v919_v3, 0.0 }
0x1183   : > { %1553 = vmatpush3.msk.msra.mxu0 %vm1149_vm6, %v920_v7  ;;  %v925_v8 = vmul.f32 %v1481_v6, %v920_v7 }
0x1184   : > { %1557 = vmatprep.subr.mxu0 %v1892_v5 }
0x1185   : > { %v927_v9 = vsel %vm926_vm7, %v925_v8, 0.0 }
0x1186   : > { %928 = vadd.xlane.f32.xlu0 %v927_v9 }
0x120f   : > { %v929_v10 = vpop.xlane.xlu0 %928 }
0x1210   : > { %v2095_v11 = vmul.f32 10.0, %v929_v10 }
0x1212   : > { %v933_v12 = vsub.f32 %v2095_v11, %v2095_v11 }
0x1214   : > { %v934_v13 = vmul.f32 1.442695, %v933_v12 }
0x1216   : > { %1715 = vpow2.f32 %v934_v13 }
0x1223   : > { %v1716_v14 = vpop.eup %1715 }
0x1224   : > { %1717 = vlog2.f32 %v1716_v14 }
0x1231   : > { %v1718_v16 = vpop.eup %1717 }
0x1232   : > { %v938_v17 = vmul.f32 0.6931472, %v1718_v16 }
0x1234   : > { %v939_v18 = vadd.f32 %v938_v17, %v2095_v11 }
0x1236   : > { %v940_v19 = vsub.f32 0.0, %v939_v18 }
0x1238   : > { %v942_v20 = vadd.f32 %v940_v19, %v2095_v11 }
0x123a   : > { %v944_v21 = vsub.f32 %v942_v20, %v942_v20 }
0x123c   : > { %v945_v22 = vmul.f32 1.442695, %v944_v21 }
0x123e   : > { %1719 = vpow2.f32 %v945_v22 }
0x124b   : > { %v1720_v23 = vpop.eup %1719 }
0x124c   : > { %1721 = vlog2.f32 %v1720_v23 }
0x1259   : > { %v1722_v24 = vpop.eup %1721 }
0x125a   : > { %v949_v25 = vmul.f32 0.6931472, %v1722_v24 }
0x125c   : > { %v950_v26 = vadd.f32 %v949_v25, %v942_v20 }
0x125e   : > { %v951_v27 = vsub.f32 0.0, %v950_v26 }
0x1260   : > { %v953_v28 = vadd.f32 %v951_v27, %v942_v20 }
0x1262   : > { %v954_v29 = vsub.f32 %v953_v28, %v953_v28 }
0x1264   : > { %v955_v30 = vmul.f32 1.442695, %v954_v29 }
0x1266   : > { %1723 = vpow2.f32 %v955_v30 }
0x1273   : > { %v1724_v31 = vpop.eup %1723 }
0x1274   : > { %1725 = vlog2.f32 %v1724_v31 }
0x1281   : > { %v1726_v32 = vpop.eup %1725 }
0x1282   : > { %v959_v33 = vmul.f32 0.6931472, %v1726_v32 }
0x1284   : > { %v960_v34 = vadd.f32 %v959_v33, %v953_v28 }
0x1286   : > { %v961_v35 = vsub.f32 0.0, %v960_v34 }
0x1288   : > { %v962_v36 = vadd.f32 %v961_v35, %v940_v19 }
0x128a   : > { %v963_v37 = vadd.f32 %v962_v36, %v2095_v11 }
0x128c   : > { %v964_v38 = vadd.f32 %v963_v37, %v951_v27 }
0x128e   : > { %v965_v39 = vsub.f32 %v964_v38, %v964_v38 }
0x1290   : > { %v966_v40 = vmul.f32 1.442695, %v965_v39 }
0x1292   : > { %1727 = vpow2.f32 %v966_v40 }
0x129f   : > { %v1728_v41 = vpop.eup %1727 }
0x12a0   : > { %1729 = vlog2.f32 %v1728_v41 }
0x12ad   : > { %v1730_v42 = vpop.eup %1729 }
0x12ae   : > { %v970_v43 = vmul.f32 0.6931472, %v1730_v42 }
0x12b0   : > { %v971_v44 = vadd.f32 %v970_v43, %v964_v38 }
0x12b2   : > { %v972_v45 = vsub.f32 0.0, %v971_v44 }
0x12b4   : > { %v973_v46 = vadd.f32 %v972_v45, %v951_v27 }
0x12b6   : > { %v974_v47 = vadd.f32 %v973_v46, %v963_v37 }
0x12b8   : > { %v975_v48 = vsub.f32 %v974_v47, %v974_v47 }
0x12ba   : > { %v976_v49 = vmul.f32 1.442695, %v975_v48 }
0x12bc   : > { %1731 = vpow2.f32 %v976_v49 }
0x12c9   : > { %v1732_v50 = vpop.eup %1731 }
0x12ca   : > { %1733 = vlog2.f32 %v1732_v50 }
0x12d7   : > { %v1734_v51 = vpop.eup %1733 }
0x12d8   : > { %v980_v52 = vmul.f32 0.6931472, %v1734_v51 }
0x12da   : > { %v981_v53 = vadd.f32 %v980_v52, %v974_v47 }
0x12dc   : > { %v982_v15 = vsub.f32 0.0, %v981_v53 }
0x12de   : > { %v983_v54 = vadd.f32 %v982_v15, %v962_v36 }
0x12e0   : > { %v984_v55 = vadd.f32 %v983_v54, %v2095_v11 }
0x12e2   : > { %v985_v56 = vadd.f32 %v984_v55, %v973_v46 }
0x12e4   : > { %v986_v57 = vsub.f32 %v985_v56, %v985_v56 }
0x12e6   : > { %v987_v58 = vmul.f32 1.442695, %v986_v57 }
0x12e8   : > { %1735 = vpow2.f32 %v987_v58 }
0x12f5   : > { %v1736_v59 = vpop.eup %1735 }
0x12f6   : > { %1737 = vlog2.f32 %v1736_v59 }
0x1303   : > { %v1738_v60 = vpop.eup %1737 }
0x1304   : > { %v991_v61 = vmul.f32 0.6931472, %v1738_v60 }
0x1306   : > { %v992_v62 = vadd.f32 %v991_v61, %v985_v56 }
0x1308   : > { %v993_v63 = vsub.f32 0.0, %v992_v62 }
0x130a   : > { %v994_v0 = vadd.f32 %v993_v63, %v973_v46 }
0x130c   : > { %v995_v1 = vadd.f32 %v994_v0, %v984_v55 }
0x130e   : > { %v996_v2 = vsub.f32 %v995_v1, %v995_v1 }
0x1310   : > { %v997_v3 = vmul.f32 1.442695, %v996_v2 }
0x1312   : > { %1739 = vpow2.f32 %v997_v3 }
0x131f   : > { %v1740_v4 = vpop.eup %1739 }
0x1320   : > { %1741 = vlog2.f32 %v1740_v4 }
0x132d   : > { %v1742_v6 = vpop.eup %1741 }
0x132e   : > { %v1001_v7 = vmul.f32 0.6931472, %v1742_v6 }
0x1330   : > { %v1002_v8 = vadd.f32 %v1001_v7, %v995_v1 }
0x1332   : > { %v1003_v9 = vsub.f32 0.0, %v1002_v8 }
0x1334   : > { %v1004_v10 = vadd.f32 %v1003_v9, %v983_v54 }
0x1336   : > { %v1005_v12 = vadd.f32 %v1004_v10, %v2095_v11 }
0x1338   : > { %v1006_v13 = vadd.f32 %v1005_v12, %v994_v0 }
0x133a   : > { %v1007_v14 = vsub.f32 %v1006_v13, %v1006_v13 }
0x133c   : > { %v1008_v16 = vmul.f32 1.442695, %v1007_v14 }
0x133e   : > { %1743 = vpow2.f32 %v1008_v16 }
0x134b   : > { %v1744_v17 = vpop.eup %1743 }
0x134c   : > { %1745 = vlog2.f32 %v1744_v17 }
0x1359   : > { %v1746_v18 = vpop.eup %1745 }
0x135a   : > { %v1012_v19 = vmul.f32 0.6931472, %v1746_v18 }
0x135c   : > { %v1013_v20 = vadd.f32 %v1012_v19, %v1006_v13 }
0x135e   : > { %v1014_v21 = vsub.f32 0.0, %v1013_v20 }
0x1360   : > { %v1015_v22 = vadd.f32 %v1014_v21, %v994_v0 }
0x1362   : > { %v1016_v23 = vadd.f32 %v1015_v22, %v1005_v12 }
0x1364   : > { %v1017_v24 = vsub.f32 %v1016_v23, %v1016_v23 }
0x1366   : > { %v1018_v25 = vmul.f32 1.442695, %v1017_v24 }
0x1368   : > { %1747 = vpow2.f32 %v1018_v25 }
0x1375   : > { %v1748_v26 = vpop.eup %1747 }
0x1376   : > { %1749 = vlog2.f32 %v1748_v26 }
0x1383   : > { %v1750_v27 = vpop.eup %1749 }
0x1384   : > { %v1022_v28 = vmul.f32 0.6931472, %v1750_v27 }
0x1386   : > { %v1023_v29 = vadd.f32 %v1022_v28, %v1016_v23 }
0x1388   : > { %v1024_v30 = vsub.f32 0.0, %v1023_v29 }
0x138a   : > { %v1025_v31 = vadd.f32 %v1024_v30, %v1004_v10 }
0x138c   : > { %v1026_v32 = vadd.f32 %v1025_v31, %v2095_v11 }
0x138e   : > { %v1027_v33 = vadd.f32 %v1026_v32, %v1015_v22 }
0x1390   : > { %v1028_v34 = vsub.f32 %v1027_v33, %v1027_v33 }
0x1392   : > { %v1029_v35 = vmul.f32 1.442695, %v1028_v34 }
0x1394   : > { %1751 = vpow2.f32 %v1029_v35 }
0x13a1   : > { %v1752_v36 = vpop.eup %1751 }
0x13a2   : > { %1753 = vlog2.f32 %v1752_v36 }
0x13af   : > { %v1754_v37 = vpop.eup %1753 }
0x13b0   : > { %v1033_v38 = vmul.f32 0.6931472, %v1754_v37 }
0x13b2   : > { %v1034_v39 = vadd.f32 %v1033_v38, %v1027_v33 }
0x13b4   : > { %v1035_v40 = vsub.f32 0.0, %v1034_v39 }
0x13b6   : > { %v1036_v41 = vadd.f32 %v1035_v40, %v1015_v22 }
0x13b8   : > { %v1037_v42 = vadd.f32 %v1036_v41, %v1026_v32 }
0x13ba   : > { %v1038_v43 = vsub.f32 %v1037_v42, %v1037_v42 }
0x13bc   : > { %v1039_v44 = vmul.f32 1.442695, %v1038_v43 }
0x13be   : > { %1755 = vpow2.f32 %v1039_v44 }
0x13cb   : > { %v1756_v45 = vpop.eup %1755 }
0x13cc   : > { %1757 = vlog2.f32 %v1756_v45 }
0x13d9   : > { %v1758_v46 = vpop.eup %1757 }
0x13da   : > { %v1043_v47 = vmul.f32 0.6931472, %v1758_v46 }
0x13dc   : > { %v1044_v48 = vadd.f32 %v1043_v47, %v1037_v42 }
0x13de   : > { %v1045_v49 = vsub.f32 0.0, %v1044_v48 }
0x13e0   : > { %v1046_v50 = vadd.f32 %v1045_v49, %v1025_v31 }
0x13e2   : > { %v1047_v51 = vadd.f32 %v1046_v50, %v2095_v11 }
0x13e4   : > { %v1048_v52 = vadd.f32 %v1047_v51, %v1036_v41 }
0x13e6   : > { %v1049_v53 = vsub.f32 %v1048_v52, %v1048_v52 }
0x13e8   : > { %v1050_v15 = vmul.f32 1.442695, %v1049_v53 }
0x13ea   : > { %1759 = vpow2.f32 %v1050_v15 }
0x13f7   : > { %v1760_v54 = vpop.eup %1759 }
0x13f8   : > { %1761 = vlog2.f32 %v1760_v54 }
0x1405   : > { %v1762_v55 = vpop.eup %1761 }
0x1406   : > { %v1054_v56 = vmul.f32 0.6931472, %v1762_v55 }
0x1408   : > { %v1055_v57 = vadd.f32 %v1054_v56, %v1048_v52 }
0x140a   : > { %v1056_v58 = vsub.f32 0.0, %v1055_v57 }
0x140c   : > { %v1057_v59 = vadd.f32 %v1056_v58, %v1036_v41 }
0x140e   : > { %v1058_v60 = vadd.f32 %v1057_v59, %v1047_v51 }
0x1410   : > { %v1059_v61 = vsub.f32 %v1058_v60, %v1058_v60 }
0x1412   : > { %v1060_v62 = vmul.f32 1.442695, %v1059_v61 }
0x1414   : > { %1763 = vpow2.f32 %v1060_v62 }
0x1421   : > { %v1764_v63 = vpop.eup %1763 }
0x1422   : > { %1765 = vlog2.f32 %v1764_v63 }
0x142f   : > { %v1766_v0 = vpop.eup %1765 }
0x1430   : > { %v1064_v1 = vmul.f32 0.6931472, %v1766_v0 }
0x1432   : > { %v1065_v2 = vadd.f32 %v1064_v1, %v1058_v60 }
0x1434   : > { %v1066_v3 = vsub.f32 0.0, %v1065_v2 }
0x1436   : > { %v1067_v4 = vadd.f32 %v1066_v3, %v1046_v50 }
0x1438   : > { %v1068_v6 = vadd.f32 %v1067_v4, %v2095_v11 }
0x143a   : > { %v1069_v7 = vadd.f32 %v1068_v6, %v1057_v59 }
0x143c   : > { %v1070_v8 = vsub.f32 %v1069_v7, %v1069_v7 }
0x143e   : > { %v1071_v9 = vmul.f32 1.442695, %v1070_v8 }
0x1440   : > { %1767 = vpow2.f32 %v1071_v9 }
0x144d   : > { %v1768_v10 = vpop.eup %1767 }
0x144e   : > { %1769 = vlog2.f32 %v1768_v10 }
0x145b   : > { %v1770_v12 = vpop.eup %1769 }
0x145c   : > { %v1075_v13 = vmul.f32 0.6931472, %v1770_v12 }
0x145e   : > { %v1076_v14 = vadd.f32 %v1075_v13, %v1069_v7 }
0x1460   : > { %v1077_v16 = vsub.f32 0.0, %v1076_v14  ;;  %v1227_v14 = vld [vmem:[#allocation2 + $0x38] sm:$0xff] }
0x1462   : > { %v1078_v17 = vadd.f32 %v1077_v16, %v1057_v59 }
0x1464   : > { %v1079_v18 = vadd.f32 %v1078_v17, %v1068_v6 }
0x1466   : > { %v1080_v19 = vsub.f32 %v1079_v18, %v1079_v18 }
0x1468   : > { %v1081_v20 = vmul.f32 1.442695, %v1080_v19  ;;  %v1306_v19 = vld [vmem:[%s2184_s6 + $0x18] sm:$0xff] }
0x1469   : > { %1569 = vmatpush3.msra.mxu1 %v1306_v19 }
0x146a   : > { %1771 = vpow2.f32 %v1081_v20  ;;  %1570 = vmatprep.subr.mxu1 %v1892_v5 }
0x1477   : > { %v1772_v21 = vpop.eup %1771 }
0x1478   : > { %1773 = vlog2.f32 %v1772_v21 }
0x1485   : > { %v1774_v22 = vpop.eup %1773 }
0x1486   : > { %v1085_v23 = vmul.f32 0.6931472, %v1774_v22  ;;  %v1305_v22 = vld [vmem:[%s2184_s6 + $0x10] sm:$0xff] }
0x1487   : > { %1571 = vmatpush3.msra.mxu1 %v1305_v22 }
0x1488   : > { %v1086_v24 = vadd.f32 %v1085_v23, %v1079_v18  ;;  %v1224_v18 = vld [vmem:[#allocation2 + $0x20] sm:$0xff]  ;;  %1572 = vmatprep.subr.mxu1 %v1892_v5  ;;  %v1304_v23 = vld [vmem:[%s2184_s6 + $0x8] sm:$0xff] }
0x1489   : > { %1573 = vmatpush3.msra.mxu1 %v1304_v23 }
0x148a   : > { %v1087_v25 = vsub.f32 0.0, %v1086_v24  ;;  %1574 = vmatprep.subr.mxu1 %v1892_v5  ;;  %v1303_v24 = vld [vmem:[%s2184_s6] sm:$0xff] }
0x148b   : > { %1575 = vmatpush3.msra.mxu1 %v1303_v24 }
0x148c   : > { %v1088_v26 = vadd.f32 %v1087_v25, %v1067_v4  ;;  %v1480_v25 = vld [vmem:[%s2183_s5 + $0x1] sm:$0x1] }
0x148e   : > { %v1089_v27 = vadd.f32 %v1088_v26, %v2095_v11 }
0x1490   : > { %v1090_v28 = vadd.f32 %v1089_v27, %v1078_v17 }
0x1492   : > { %v1091_v29 = vsub.f32 %v1090_v28, %v1090_v28 }
0x1494   : > { %v1092_v30 = vmul.f32 1.442695, %v1091_v29 }
0x1496   : > { %1775 = vpow2.f32 %v1092_v30 }
0x14a3   : > { %v1776_v31 = vpop.eup %1775 }
0x14a4   : > { %1777 = vlog2.f32 %v1776_v31 }
0x14b1   : > { %v1778_v32 = vpop.eup %1777 }
0x14b2   : > { %v1096_v33 = vmul.f32 0.6931472, %v1778_v32 }
0x14b4   : > { %v1097_v34 = vadd.f32 %v1096_v33, %v1090_v28 }
0x14b6   : > { %v1098_v35 = vsub.f32 0.0, %v1097_v34 }
0x14b8   : > { %v1099_v36 = vadd.f32 %v1098_v35, %v1078_v17  ;;  %v1226_v17 = vld [vmem:[#allocation2 + $0x30] sm:$0xff] }
0x14ba   : > { %v1100_v37 = vadd.f32 %v1099_v36, %v1089_v27 }
0x14bc   : > { %v1101_v38 = vsub.f32 %v1100_v37, %v1100_v37 }
0x14be   : > { %v1102_v39 = vmul.f32 1.442695, %v1101_v38 }
0x14c0   : > { %1779 = vpow2.f32 %v1102_v39 }
0x14cd   : > { %v1780_v40 = vpop.eup %1779 }
0x14ce   : > { %1781 = vlog2.f32 %v1780_v40 }
0x14db   : > { %v1782_v41 = vpop.eup %1781 }
0x14dc   : > { %v1106_v42 = vmul.f32 0.6931472, %v1782_v41 }
0x14de   : > { %v1107_v43 = vadd.f32 %v1106_v42, %v1100_v37 }
0x14e0   : > { %v1108_v44 = vsub.f32 0.0, %v1107_v43 }
0x14e2   : > { %v1109_v45 = vadd.f32 %v1108_v44, %v1088_v26 }
0x14e4   : > { %v1110_v46 = vadd.f32 %v1109_v45, %v2095_v11 }
0x14e6   : > { %v1111_v47 = vadd.f32 %v1110_v46, %v1099_v36 }
0x14e8   : > { %v1112_v48 = vsub.f32 %v1111_v47, %v1111_v47 }
0x14ea   : > { %v1113_v49 = vmul.f32 1.442695, %v1112_v48 }
0x14ec   : > { %1783 = vpow2.f32 %v1113_v49 }
0x14f9   : > { %v1784_v50 = vpop.eup %1783 }
0x14fa   : > { %1785 = vlog2.f32 %v1784_v50 }
0x1507   : > { %v1786_v51 = vpop.eup %1785 }
0x1508   : > { %v1117_v52 = vmul.f32 0.6931472, %v1786_v51 }
0x150a   : > { %v1118_v53 = vadd.f32 %v1117_v52, %v1111_v47 }
0x150c   : > { %v1119_v15 = vsub.f32 0.0, %v1118_v53 }
0x150e   : > { %v1120_v54 = vadd.f32 %v1119_v15, %v1099_v36 }
0x1510   : > { %v1121_v55 = vadd.f32 %v1120_v54, %v1110_v46 }
0x1512   : > { %v1122_v56 = vsub.f32 %v1121_v55, %v1121_v55 }
0x1514   : > { %v1123_v57 = vmul.f32 1.442695, %v1122_v56 }
0x1516   : > { %1787 = vpow2.f32 %v1123_v57 }
0x1523   : > { %v1788_v58 = vpop.eup %1787 }
0x1524   : > { %1789 = vlog2.f32 %v1788_v58 }
0x1531   : > { %v1790_v59 = vpop.eup %1789 }
0x1532   : > { %v1127_v60 = vmul.f32 0.6931472, %v1790_v59 }
0x1534   : > { %v1128_v61 = vadd.f32 %v1127_v60, %v1121_v55 }
0x1536   : > { %v1129_v62 = vsub.f32 0.0, %v1128_v61 }
0x1538   : > { %v1130_v63 = vadd.f32 %v1129_v62, %v1109_v45 }
0x153a   : > { %v1131_v0 = vadd.f32 %v1130_v63, %v2095_v11  ;;  %v1225_v11 = vld [vmem:[#allocation2 + $0x28] sm:$0xff] }
0x153c   : > { %v1132_v1 = vadd.f32 %v1131_v0, %v1120_v54 }
0x153e   : > { %v1133_v2 = vsub.f32 %v1132_v1, %v1132_v1 }
0x1540   : > { %v1134_v3 = vmul.f32 1.442695, %v1133_v2 }
0x1542   : > { %1791 = vpow2.f32 %v1134_v3 }
0x154f   : > { %v1792_v4 = vpop.eup %1791 }
0x1550   : > { %1793 = vlog2.f32 %v1792_v4 }
0x155d   : > { %v1794_v6 = vpop.eup %1793 }
0x155e   : > { %v1138_v7 = vmul.f32 0.6931472, %v1794_v6 }
0x1560   : > { %v1139_v8 = vadd.f32 %v1138_v7, %v1132_v1 }
0x1562   : > { %v1140_v9 = vsub.f32 0.0, %v1139_v8 }
0x1564   : > { %v1141_v10 = vadd.f32 %v1140_v9, %v1120_v54 }
0x1566   : > { %v1142_v12 = vadd.f32 %v1141_v10, %v1131_v0 }
0x1568   : > { %v1143_v13 = vmul.f32 1.442695, %v1142_v12 }
0x156a   : > { %1795 = vpow2.f32 %v1143_v13 }
0x1577   : > { %v1796_v16 = vpop.eup %1795 }
0x1578   : > { %1555 = vmatmul.mubr.msk.f32.vlgmr.msra.gmra.mxu0 %vm1145_vm8, %v1796_v16 }
0x1579   : > { %1558 = vmatpush3.msra.mxu0 %v1227_v14  ;;  %1565 = vmatprep.mubr.msk.f32.mxu0 %vm1893_vm2, %v1892_v5 }
0x157a   : > { %1559 = vmatprep.subr.mxu0 %v1892_v5 }
0x157b   : > { %1560 = vmatpush3.msra.mxu0 %v1226_v17 }
0x157c   : > { %1561 = vmatprep.subr.mxu0 %v1892_v5 }
0x157d   : > { %1562 = vmatpush3.msra.mxu0 %v1225_v11 }
0x157e   : > { %1563 = vmatprep.subr.mxu0 %v1892_v5  ;;  %v1307_v5 = vld [vmem:[%s2185_s7] sm:$0x1] }
0x157f   : > { %1564 = vmatpush3.msra.mxu0 %v1224_v18 }
0x1638   : > { %v1219_v20 = vpop.f32.mrf.mxu0 }
0x1639   : > { %1566 = vmatmul.mubr.msk.f32.vlgmr.msra.gmra.mxu0 %vm420_vm3, %v1219_v20 }
0x163a   : > { %v1556_v21 = vpop.f32.mrf.mxu0 }
0x16f9   : > { %v1297_v26 = vpop.f32.mrf.mxu0 }
0x16fa   : > { %v1301_v27 = vadd.f32 %v1480_v25, %v1297_v26 }
0x16fb   : > { %v1567_v28 = vpop.f32.mrf.mxu0 }
0x16fc   : > { %v1302_v29 = vmax.f32 %v1301_v27, 0.0 }
0x16fe   : > { %1577 = vmatmul.mubr.msk.f32.vlgmr.msra.gmra.mxu1 %vm420_vm3, %v1302_v29 }
0x17be   : > { %v1377_v30 = vpop.f32.mrf.mxu1 }
0x17bf   : > { %v1378_v31 = vadd.f32 %v1377_v30, %v1307_v5 }
0x17c0   : > { %v1578_v32 = vpop.f32.mrf.mxu1 }
0x17c1   : > { %1381 = vst [vmem:[%s312_s19] sm:$0x1] %v1378_v31 }
0x17c2   : > { %1836 = shalt.err (!%p1833_p0)
}
0x17c3   : > { %s1837_s13 = scalar_lea.hbm %s2143_s23, 16  ;;  %s1841_s17 = scalar_lea.hbm %s2186_s8, 32 }
0x17c4   : > { %p1838_p1 = scmp.ne.s32.totalorder %s2143_s23, %s1837_s13  ;;  %p1842_p4 = scmp.lt.s32.totalorder %s2143_s23, %s2186_s8 }
0x17c5   : > { %p1843_p7 = scmp.lt.s32.totalorder %s1841_s17, %s1837_s13 }
0x17c6   : > { %p1839_p2 = pnand %p1838_p1, %p1978_p5 }
0x17c7   : > { %p1844_p8 = por %p1843_p7, %p1842_p4 }
0x17c8   : > { %p1840_p3 = pneg %p1839_p2 }
0x17ca   : > { %p1845_p6 = pnand %p1844_p8, %p1840_p3 }
0x17cc   : > { %1848 = shalt.err (!%p1845_p6)
}
0x17cd   : > { %1583 = dma.vmem_to_hbm [thread:$0]  (%p1978_p5), %s1396_s20, 16, %s2143_s23, %s1383_s24  }
0x17ce PF: > { %p1595_p9 = scmp.ge.s32.totalorder %s1887_s30, 2  ;;  %s1407_s22 = sand.u32 1, %s1875_s27  }
0x17cf   : > { %p2190_p10 = scmp.ne.s32.totalorder %s2188_s16, 0  ;;  %s1408_s25 = scalar_lea.sflag [#allocation4], %s1407_s22 }
0x17d1   : > { %p1590_p11 = pnand %p1595_p9, %p2190_p10 }
0x17d3   : > { %p1591_p12 = pneg %p1590_p11 }
0x17d5   : > { %1870 = dma.done.wait (%p1591_p12), %s1408_s25, 16  }
0x17d6   : > { %1872 = vsyncadd (%p1591_p12), %s1408_s25, 4294967280  ;;  %p19_p13 = scmp.ge.s32.totalorder %s1965_s11, 4   ;;  %s2191_s27 = smov %s1879_s28 }
0x17d7   : > { %s2192_s28 = smov %s1883_s29  ;;  %s2193_s29 = smov %s1976_s14 }
0x17d8   : > { %s2194_s30 = smov %s1965_s11  ;;  %21 = sbr.rel (!%p19_p13) target bundleno = 4 (0x4), region = 95 }
0x17dd   :  { %1412 = vsyncpa [#allocation3], 1 }
0x17de   :  { %1414 = vsyncpa [#allocation3 + $0x1], 1 }
0x17df   :  { %1415 = vsyncpa [#allocation4], 1 }
0x17e0   :  { %1417 = vsyncpa [#allocation4 + $0x1], 1 }

</bundles_post_ra>
